<compile_context>
chip_gen: v5e
topology: v5e:2x2
jax: 0.10.0
libtpu: 0.0.40
codegen_flags: <defaults>
</compile_context>

<pallas_src>
import jax
import jax.numpy as jnp
from jax.experimental import pallas as pl
from jax.experimental.pallas import tpu as pltpu

BN_EPS = 1e-5


# --------------------------------------------------------------------------
# Path A: fused — no K reduction axis (full F_in contraction per grid step).
# --------------------------------------------------------------------------
def _block_fused_kernel(x_ref, w_ref, gamma_ref, beta_ref, o_ref):
    # Single MXU matmul for this output tile: [B, F_in] @ [F_in, TN] -> f32.
    y = jnp.dot(x_ref[...], w_ref[...], preferred_element_type=jnp.float32)

    # BatchNorm1d training-mode statistics (biased 1/B variance, matching
    # PyTorch's normalization).  Two-pass variance avoids cancellation.
    mean = jnp.mean(y, axis=0, keepdims=True)                    # [1, TN]
    var = jnp.mean(jnp.square(y - mean), axis=0, keepdims=True)  # [1, TN]

    # Fold BN into one per-feature scale/shift (rsqrt -> EUP slot).
    a = gamma_ref[...] * jax.lax.rsqrt(var + BN_EPS)
    c = beta_ref[...] - mean * a

    # ReLU, lane-dense store (TN multiple of 128 -> unmasked vst).
    o_ref[...] = jnp.maximum(y * a + c, 0.0).astype(o_ref.dtype)


# --------------------------------------------------------------------------
# Path B: K-streamed fallback — for F_in too large to hold a full weight slab.
# --------------------------------------------------------------------------
def _block_streamk_kernel(x_ref, w_ref, gamma_ref, beta_ref, o_ref, acc_ref):
    k = pl.program_id(1)

    @pl.when(k == 0)
    def _():
        acc_ref[...] = jnp.zeros_like(acc_ref)

    acc_ref[...] += jnp.dot(x_ref[...], w_ref[...],
                            preferred_element_type=jnp.float32)

    @pl.when(k == pl.num_programs(1) - 1)
    def _():
        y = acc_ref[...]                                             # [B, TN] f32
        mean = jnp.mean(y, axis=0, keepdims=True)
        var = jnp.mean(jnp.square(y - mean), axis=0, keepdims=True)  # two-pass
        a = gamma_ref[...] * jax.lax.rsqrt(var + BN_EPS)
        c = beta_ref[...] - mean * a
        o_ref[...] = jnp.maximum(y * a + c, 0.0).astype(o_ref.dtype)


def block_forward(x, w_t, b, gamma, beta, *, tn=512, tk=512, out_dtype=None,
                  vmem_budget_bytes=48 * 1024 * 1024, prefer_fused=True):
    """Forward of `Block` (Linear -> BatchNorm1d(train) -> ReLU).

    x:      [B, F_in]       (f32 or bf16)
    w_t:    [F_in, F_out]   (Linear weight, already transposed; f32 or bf16)
    b:      [1, F_out]      (Linear bias — accepted for API fidelity, but it
                             cancels exactly under training-mode BN and is not
                             streamed into the kernel)
    gamma:  [1, F_out], beta: [1, F_out]   (BatchNorm affine params)
    """
    del b  # mathematically dead under training-mode BN (see TODO above)

    B, f_in = x.shape
    f_out = w_t.shape[1]
    out_dtype = out_dtype or x.dtype

    # Clamp tiles to the problem, keep them lane-dense.
    tn = min(tn, f_out)
    tk = min(tk, f_in)
    assert f_out % tn == 0 and tn % 128 == 0, "tn must divide F_out, mult of 128"
    assert f_in % tk == 0 and tk % 128 == 0, "tk must divide F_in, mult of 128"

    xb = x.dtype.itemsize
    wb = w_t.dtype.itemsize
    ob = jnp.dtype(out_dtype).itemsize

    # ---- VMEM footprint estimates (double-buffer inputs/outputs, conservative)
    fused_bytes = (2 * B * f_in * xb          # x resident (counted x2 to be safe)
                   + 2 * f_in * tn * wb       # weight slab, double-buffered
                   + 2 * B * tn * ob          # output tile, double-buffered
                   + 4 * tn * 4)              # gamma/beta
    use_fused = prefer_fused and fused_bytes <= vmem_budget_bytes

    if use_fused:
        footprint = fused_bytes
        grid = (f_out // tn,)
        kernel = _block_fused_kernel
        in_specs = [
            pl.BlockSpec((B, f_in), lambda j: (0, 0)),   # x: constant block -> DMA'd once
            pl.BlockSpec((f_in, tn), lambda j: (0, j)),  # weight slab streamed over F_out
            pl.BlockSpec((1, tn), lambda j: (0, j)),     # gamma
            pl.BlockSpec((1, tn), lambda j: (0, j)),     # beta
        ]
        out_specs = pl.BlockSpec((B, tn), lambda j: (0, j))
        scratch_shapes = []
        # F_out tiles are fully independent -> "parallel" (shards across the
        # two TensorCores on v7x; no-op on single-TC v5e/v6e).
        dims = ("parallel",)
    else:
        footprint = (2 * B * tk * xb + 2 * tk * tn * wb
                     + B * tn * 4 + 2 * B * tn * ob + 4 * tn * 4)
        grid = (f_out // tn, f_in // tk)       # reduction axis last
        kernel = _block_streamk_kernel
        in_specs = [
            pl.BlockSpec((B, tk), lambda j, k: (0, k)),
            pl.BlockSpec((tk, tn), lambda j, k: (k, j)),
            pl.BlockSpec((1, tn), lambda j, k: (0, j)),
            pl.BlockSpec((1, tn), lambda j, k: (0, j)),
        ]
        out_specs = pl.BlockSpec((B, tn), lambda j, k: (0, j))
        scratch_shapes = [pltpu.VMEM((B, tn), jnp.float32)]
        dims = ("parallel", "arbitrary")

    # Scoped-VMEM limit: footprint + 25% headroom, floored at 32 MiB, capped at
    # 64 MiB so it is valid on v7x (64 MiB physical) and overrides the small
    # scoped defaults on v5e (16 MiB) / v6e (32 MiB).
    vmem_limit = int(min(max(footprint * 5 // 4, 32 * 1024 * 1024),
                         64 * 1024 * 1024))
    assert footprint <= vmem_limit, "tile config exceeds VMEM budget"

    return pl.pallas_call(
        kernel,
        out_shape=jax.ShapeDtypeStruct((B, f_out), out_dtype),
        grid_spec=pltpu.PrefetchScalarGridSpec(
            num_scalar_prefetch=0,
            grid=grid,
            in_specs=in_specs,
            out_specs=out_specs,
            scratch_shapes=scratch_shapes,
        ),
        compiler_params=pltpu.CompilerParams(
            dimension_semantics=dims,
            vmem_limit_bytes=vmem_limit,
        ),
    )(x, w_t, gamma, beta)


def reference_forward(x, w_t, b, gamma, beta):
    y = x.astype(jnp.float32) @ w_t.astype(jnp.float32) + b
    mean = jnp.mean(y, axis=0, keepdims=True)
    var = jnp.mean((y - mean) ** 2, axis=0, keepdims=True)
    y_hat = (y - mean) / jnp.sqrt(var + BN_EPS)
    z = gamma * y_hat + beta
    return jnp.maximum(z, 0.0)


if __name__ == "__main__":
    key = jax.random.PRNGKey(0)
    k_x, k_w, k_b = jax.random.split(key, 3)

    # Small, lane-dense shapes (multiples of 256 to match the v6e/v7x MXU).
    B, F_IN, F_OUT = 64, 512, 1024
    TN = 512

    # Input: [batch size, number of features]
    x = jax.random.normal(k_x, (B, F_IN), dtype=jnp.float32)

    # Linear params (PyTorch stores weight as [out, in]; kernel wants [in, out]).
    bound = 1.0 / jnp.sqrt(F_IN)
    w = jax.random.uniform(k_w, (F_OUT, F_IN), minval=-bound, maxval=bound,
                           dtype=jnp.float32)
    w_t = jnp.asarray(w.T)                               # [F_in, F_out]
    b = jax.random.uniform(k_b, (1, F_OUT), minval=-bound, maxval=bound,
                           dtype=jnp.float32)
    gamma = jnp.ones((1, F_OUT), dtype=jnp.float32)      # BatchNorm1d init
    beta = jnp.zeros((1, F_OUT), dtype=jnp.float32)

    ref = reference_forward(x, w_t, b, gamma, beta)

    # Path A: fused (no K grid axis) — the default / preferred path.
    out_fused = jax.block_until_ready(
        block_forward(x, w_t, b, gamma, beta, tn=TN))
    assert out_fused.shape == (B, F_OUT)
    assert jnp.allclose(out_fused, ref, atol=1e-4, rtol=1e-4), \
        "fused path mismatch vs reference"

    # Path B: K-streamed fallback (large-F_in structure) — exercised for coverage.
    out_stream = jax.block_until_ready(
        block_forward(x, w_t, b, gamma, beta, tn=TN, tk=256, prefer_fused=False))
    assert jnp.allclose(out_stream, ref, atol=1e-4, rtol=1e-4), \
        "stream-K path mismatch vs reference"

    print("KERNEL_OK")
</pallas_src>

<mosaic_0001>
module attributes {stable_mosaic.version = 11 : i64} {
  func.func @_block_fused_kernel(%arg0: i32, %arg1: memref<64x512xf32, #tpu.memory_space<vmem>>, %arg2: memref<512x512xf32, #tpu.memory_space<vmem>>, %arg3: memref<1x512xf32, #tpu.memory_space<vmem>>, %arg4: memref<1x512xf32, #tpu.memory_space<vmem>>, %arg5: memref<64x512xf32, #tpu.memory_space<vmem>>) attributes {dimension_semantics = [#tpu.dimension_semantics<parallel>], iteration_bounds = array<i64: 2>, scalar_prefetch = 0 : i64, scratch_operands = 0 : i64, tpu.core_type = #tpu.core_type<tc>, window_params = [{pipeline_mode = #tpu.pipeline_mode<synchronous>, transform_indices = @transform_0, window_bounds = array<i64: 64, 512>}, {transform_indices = @transform_1, window_bounds = array<i64: 512, 512>}, {transform_indices = @transform_2, window_bounds = array<i64: 1, 512>}, {transform_indices = @transform_3, window_bounds = array<i64: 1, 512>}, {transform_indices = @transform_4, window_bounds = array<i64: 64, 512>}]} {
    %c0 = arith.constant 0 : index
    %c0_0 = arith.constant 0 : index
    %0 = vector.load %arg1[%c0, %c0_0] : memref<64x512xf32, #tpu.memory_space<vmem>>, vector<64x512xf32>
    %c0_1 = arith.constant 0 : index
    %c0_2 = arith.constant 0 : index
    %1 = vector.load %arg2[%c0_1, %c0_2] : memref<512x512xf32, #tpu.memory_space<vmem>>, vector<512x512xf32>
    %cst = arith.constant dense<0.000000e+00> : vector<64x512xf32>
    %2 = tpu.matmul %0, %1, %cst {dimension_numbers = #tpu.dot_dimension_numbers<[1], [0], [0], [1], [0, 0, 1, 1], [], []>} : vector<64x512xf32>, vector<512x512xf32>, vector<64x512xf32> -> vector<64x512xf32>
    %cst_3 = arith.constant dense<0.000000e+00> : vector<512xf32>
    %3 = vector.multi_reduction <add>, %2, %cst_3 [0] : vector<64x512xf32> to vector<512xf32>
    %4 = vector.shape_cast %3 : vector<512xf32> to vector<1x512xf32>
    %cst_4 = arith.constant 6.400000e+01 : f32
    %5 = vector.broadcast %cst_4 : f32 to vector<1x512xf32>
    %6 = arith.divf %4, %5 : vector<1x512xf32>
    %7 = vector.broadcast %6 : vector<1x512xf32> to vector<64x512xf32>
    %8 = arith.subf %2, %7 : vector<64x512xf32>
    %9 = arith.mulf %8, %8 : vector<64x512xf32>
    %cst_5 = arith.constant dense<0.000000e+00> : vector<512xf32>
    %10 = vector.multi_reduction <add>, %9, %cst_5 [0] : vector<64x512xf32> to vector<512xf32>
    %11 = vector.shape_cast %10 : vector<512xf32> to vector<1x512xf32>
    %cst_6 = arith.constant 6.400000e+01 : f32
    %12 = vector.broadcast %cst_6 : f32 to vector<1x512xf32>
    %13 = arith.divf %11, %12 : vector<1x512xf32>
    %c0_7 = arith.constant 0 : index
    %c0_8 = arith.constant 0 : index
    %14 = vector.load %arg3[%c0_7, %c0_8] : memref<1x512xf32, #tpu.memory_space<vmem>>, vector<1x512xf32>
    %cst_9 = arith.constant 9.99999974E-6 : f32
    %15 = vector.broadcast %cst_9 : f32 to vector<1x512xf32>
    %16 = arith.addf %13, %15 : vector<1x512xf32>
    %17 = math.rsqrt %16 : vector<1x512xf32>
    %18 = arith.mulf %14, %17 : vector<1x512xf32>
    %c0_10 = arith.constant 0 : index
    %c0_11 = arith.constant 0 : index
    %19 = vector.load %arg4[%c0_10, %c0_11] : memref<1x512xf32, #tpu.memory_space<vmem>>, vector<1x512xf32>
    %20 = arith.mulf %6, %18 : vector<1x512xf32>
    %21 = arith.subf %19, %20 : vector<1x512xf32>
    %22 = vector.broadcast %18 : vector<1x512xf32> to vector<64x512xf32>
    %23 = arith.mulf %2, %22 : vector<64x512xf32>
    %24 = vector.broadcast %21 : vector<1x512xf32> to vector<64x512xf32>
    %25 = arith.addf %23, %24 : vector<64x512xf32>
    %cst_12 = arith.constant 0.000000e+00 : f32
    %26 = vector.broadcast %cst_12 : f32 to vector<64x512xf32>
    %27 = arith.maximumf %25, %26 : vector<64x512xf32>
    %c0_13 = arith.constant 0 : index
    %c0_14 = arith.constant 0 : index
    %28 = vector.load %arg5[%c0_13, %c0_14] : memref<64x512xf32, #tpu.memory_space<vmem>>, vector<64x512xf32>
    tpu.vector_store %arg5[%c0_13, %c0_14], %27 {strides = array<i32>} : memref<64x512xf32, #tpu.memory_space<vmem>>, vector<64x512xf32>,
    return
  }
  func.func @transform_0(%arg0: i32) -> (i32, i32) {
    %c0_i32 = arith.constant 0 : i32
    %c0_i32_0 = arith.constant 0 : i32
    %c0_i32_1 = arith.constant 0 : i32
    return %c0_i32, %c0_i32_0 : i32, i32
  }
  func.func @transform_1(%arg0: i32) -> (i32, i32) {
    %c0_i32 = arith.constant 0 : i32
    %c0_i32_0 = arith.constant 0 : i32
    return %c0_i32, %arg0 : i32, i32
  }
  func.func @transform_2(%arg0: i32) -> (i32, i32) {
    %c0_i32 = arith.constant 0 : i32
    %c0_i32_0 = arith.constant 0 : i32
    return %c0_i32, %arg0 : i32, i32
  }
  func.func @transform_3(%arg0: i32) -> (i32, i32) {
    %c0_i32 = arith.constant 0 : i32
    %c0_i32_0 = arith.constant 0 : i32
    return %c0_i32, %arg0 : i32, i32
  }
  func.func @transform_4(%arg0: i32) -> (i32, i32) {
    %c0_i32 = arith.constant 0 : i32
    %c0_i32_0 = arith.constant 0 : i32
    return %c0_i32, %arg0 : i32, i32
  }
}

</mosaic_0001>

<bundles_post_ra>
// kernel: tpu_custom_call.1
= control target key start
LH: loop header
LB: loop body
LE: loop exit
PB: predicated region body
PF: predicated region fallthrough
CT: control target
= control target key end

     0   :  { %s3169_s0 = inlined_call_operand.hbm [shape: f32[64,512], index: 0, kind: input, shape index: {}]   ;;  %s3170_s1 = inlined_call_operand.hbm [shape: f32[512,1024], index: 1, kind: input, shape index: {}]   ;;  %s3171_s2 = inlined_call_operand.hbm [shape: f32[1,1024], index: 2, kind: input, shape index: {}]   ;;  %s3172_s3 = inlined_call_operand.hbm [shape: f32[1,1024], index: 3, kind: input, shape index: {}]   ;;  %s3173_s4 = inlined_call_operand.hbm [shape: f32[64,1024], index: 4, kind: output, shape index: {}]  }
   0x1   :  { %3181 = sst [smem:[#allocation22_spill]] %s3169_s0 }
   0x2   :  { %3182 = sst [smem:[#allocation23_spill]] %s3170_s1 }
   0x3   :  { %9 = vsyncpa [#allocation3], 0 }
   0x4   :  { %10 = vsyncpa [#allocation6], 0 }
   0x5   :  { %12 = vsyncpa [#allocation6 + $0x1], 0 }
   0x6   :  { %13 = vsyncpa [#allocation9], 0 }
   0x7   :  { %15 = vsyncpa [#allocation9 + $0x1], 0 }
   0x8   :  { %16 = vsyncpa [#allocation4], 0 }
   0x9   :  { %18 = vsyncpa [#allocation4 + $0x1], 0  ;;  %s2159_s15 = smov 0   ;;  %s2161_s16 = smov 0  }
   0xa   :  { %s2163_s17 = smov 0   ;;  %s2165_s18 = smov 0  }
   0xb LB: > { %s2180_s19 = sadd.s32 1, %s2124_s18   ;;  %s52_s20 = sadd.s32 1, %s2120_s17  ;;  %s2124_s18 = sphi %s2165_s18, %s3210_s18   ;;  %s2120_s17 = sphi %s2163_s17, %s3209_s17   ;;  %s2116_s16 = sphi %s2161_s16, %s3208_s16   ;;  %s2112_s15 = sphi %s2159_s15, %s3207_s15  }
   0xc   : > { %s49_s21 = ssub.s32 %s2124_s18, %s2180_s19  ;;  %p59_p0 = scmp.ne.s32.totalorder %s2120_s17, %s2116_s16 }
   0xd   : > { %p50_p1 = scmp.eq.s32.totalorder %s49_s21, 0  ;;  %p60_p2 = scmp.eq.s32.totalorder %s2124_s18, 0 }
   0xe   : > { %p1863_p5 = scmp.lt.s32.totalorder %s2124_s18, 2  ;;  %s181_s24 = sand.u32 1, %s2124_s18  }
   0xf   : > { %s2189_s22 = scalar_select %p50_p1, %s2120_s17, %s52_s20  }
  0x10   : > { %p2194_p3 = por %p60_p2, %p59_p0  ;;  %s2202_s25 = sand.u32 1, %s2120_s17  }
  0x11   : > { %3183 = sst [smem:[#allocation15_spill]] %s2189_s22  ;;  %s1812_s26 = sshll.u32 %s2202_s25, 11 }
  0x12   : > { %s1830_s27 = sshll.u32 %s2124_s18, 5  ;;  %s3185_s1 = sld [smem:[#allocation23_spill]] }
  0x13   : > { %s185_s6 = scalar_lea.vmem [#allocation5], %s1812_s26  ;;  %p2211_p6 = pnand %p1863_p5, %p2194_p3 }
  0x14   : > { %s193_s7 = sshll.u32 %s185_s6, 4  ;;  %s2216_s9 = sadd.s32 4294967295, %s2124_s18   ;;  %s194_s7 = int_to_ptr.vmem [resolvable:$true] %s193_s7 }
  0x15   : > { %s2218_s10 = scalar_lea.sflag [#allocation6], %s181_s24  ;;  %p1934_p8 = pneg %p2211_p6 }
  0x18   : > { %s190_s30 = scalar_lea.hbm %s3185_s1, %s1830_s27  ;;  %s1937_s20 = scalar_lea.hbm %s3185_s1, 4096 }
  0x19   : > { %s191_s5 = sshll.u32 %s190_s30, 4  ;;  %s192_s5 = int_to_ptr.hbm [resolvable:$true] %s191_s5 }
  0x1a   : > { %s1930_s11 = sshra.s32 %s192_s5, 4  ;;  %s1931_s11 = int_to_ptr.hbm [resolvable:$true] %s1930_s11 }
  0x1b   : > { %s1932_s12 = scalar_lea.hbm %s1931_s11, 2048  ;;  %p1938_p11 = scmp.lt.s32.totalorder %s1931_s11, %s3185_s1 }
  0x1c   : > { %p1933_p7 = scmp.ne.s32.totalorder %s1931_s11, %s1932_s12  ;;  %p1939_p12 = scmp.lt.s32.totalorder %s1937_s20, %s1932_s12 }
  0x1e   : > { %p1935_p9 = pnand %p1934_p8, %p1933_p7  ;;  %p1940_p13 = por %p1939_p12, %p1938_p11 }
  0x20   : > { %p1936_p10 = pneg %p1935_p9 }
  0x22   : > { %p1941_p1 = pnand %p1940_p13, %p1936_p10 }
  0x24   : > { %1944 = shalt.err (!%p1941_p1)
}
  0x25   : > { %s2126_s24 = smov 1024   ;;  %s3174_s26 = smov 512  }
  0x26   : > { %s2128_s27 = smov 32   ;;  %s1808_s28 = sadd.s32 4294967294, %s2124_s18  }
  0x27   : > { %1851 = dma.hbm_to_vmem [thread:$0]  (!%p2211_p6), %s192_s5, 32768, %s194_s7, %s2218_s10, %s2126_s24, %s3174_s26, %s2128_s27  }
  0x28   : > { %p65_p2 = scmp.ne.s32.totalorder %s2116_s16, %s2112_s15  ;;  %p66_p3 = scmp.eq.s32.totalorder %s2216_s9, 0 }
  0x29   : > { %p141_p5 = scmp.eq.s32.totalorder %s2216_s9, 1  ;;  %p147_p7 = scmp.eq.s32.totalorder %s1808_s28, 1 }
  0x2a   : > { %p1809_p9 = scmp.ge.s32.totalorder %s2124_s18, 1  ;;  %p2244_p10 = por %p66_p3, %p65_p2 }
  0x2b   : > { %p2251_p11 = por %p141_p5, %p59_p0  ;;  %p2255_p12 = por %p147_p7, %p65_p2 }
  0x2c   : > { %p154_p13 = scmp.lt.s32.totalorder %s2124_s18, 3  ;;  %s3190_s0 = sld [smem:[#allocation22_spill]] }
  0x2d   : > { %s1815_s13 = sshll.u32 %s2202_s25, 2  ;;  %s2129_s14 = smov [#allocation2]  }
  0x2e   : > { %p2263_p1 = pnand %p1809_p9, %p154_p13  ;;  %s167_s20 = sshll.u32 %s2129_s14, 4  ;;  %s168_s20 = int_to_ptr.vmem [resolvable:$true] %s167_s20 }
  0x2f   : > { %s1816_s21 = sshll.u32 %s2124_s18, 2  ;;  %s207_s6 = scalar_lea.vmem [#allocation7], %s1815_s13 }
  0x30   : > { %p1844_p0 = pneg %p2263_p1  ;;  %s211_s28 = scalar_lea.hbm %s3171_s2, %s1816_s21 }
  0x31   : > { %s215_s7 = sshll.u32 %s207_s6, 4  ;;  %s213_s26 = sshll.u32 %s211_s28, 4  ;;  %s214_s26 = int_to_ptr.hbm [resolvable:$true] %s213_s26  ;;  %s216_s7 = int_to_ptr.vmem [resolvable:$true] %s215_s7 }
  0x32   : > { %s165_s11 = sshll.u32 %s3190_s0, 4  ;;  %p1845_p2 = pnand %p1844_p0, %p66_p3  ;;  %s166_s11 = int_to_ptr.hbm [resolvable:$true] %s165_s11 }
  0x33   : > { %s3192_s0 = smov 512   ;;  %s1990_s1 = sshra.s32 %s214_s26, 4  ;;  %s1991_s1 = int_to_ptr.hbm [resolvable:$true] %s1990_s1 }
  0x34   : > { %1847 = dma.hbm_to_vmem [thread:$0]  (!%p1845_p2), %s166_s11, 4096, %s168_s20, [#allocation3], %s3192_s0, %s3192_s0, %s2128_s27  }
  0x35   : > { %s1992_s14 = scalar_lea.hbm %s1991_s1, 4  ;;  %s1997_s24 = scalar_lea.hbm %s3171_s2, 8 }
  0x36   : > { %p1993_p5 = scmp.ne.s32.totalorder %s1991_s1, %s1992_s14  ;;  %p1998_p13 = scmp.lt.s32.totalorder %s1991_s1, %s3171_s2 }
  0x37   : > { %p1999_p0 = scmp.lt.s32.totalorder %s1997_s24, %s1992_s14 }
  0x38   : > { %p1995_p7 = pnand %p1993_p5, %p1934_p8 }
  0x39   : > { %p2000_p2 = por %p1999_p0, %p1998_p13 }
  0x3a   : > { %p1996_p9 = pneg %p1995_p7 }
  0x3c   : > { %p2001_p4 = pnand %p2000_p2, %p1996_p9 }
  0x3e   : > { %2004 = shalt.err (!%p2001_p4)
}
  0x3f   : > { %1854 = dma.hbm_to_vmem [thread:$0]  (!%p2211_p6), %s214_s26, 64, %s216_s7, %s2218_s10  }
  0x40   : > { %s230_s11 = scalar_lea.hbm %s3172_s3, %s1816_s21  ;;  %s226_s22 = scalar_lea.vmem [#allocation8], %s1815_s13 }
  0x41   : > { %s234_s20 = sshll.u32 %s226_s22, 4  ;;  %s232_s23 = sshll.u32 %s230_s11, 4  ;;  %s235_s20 = int_to_ptr.vmem [resolvable:$true] %s234_s20  ;;  %s233_s23 = int_to_ptr.hbm [resolvable:$true] %s232_s23 }
  0x42   : > { %s223_s1 = scalar_lea.sflag [#allocation9], %s2202_s25  ;;  %s2020_s14 = sshra.s32 %s233_s23, 4  ;;  %s2021_s14 = int_to_ptr.hbm [resolvable:$true] %s2020_s14 }
  0x43   : > { %s2022_s24 = scalar_lea.hbm %s2021_s14, 4  ;;  %s2027_s26 = scalar_lea.hbm %s3172_s3, 8 }
  0x44   : > { %p2023_p4 = scmp.ne.s32.totalorder %s2021_s14, %s2022_s24  ;;  %p2028_p9 = scmp.lt.s32.totalorder %s2021_s14, %s3172_s3 }
  0x45   : > { %p2029_p13 = scmp.lt.s32.totalorder %s2027_s26, %s2022_s24 }
  0x46   : > { %p2025_p5 = pnand %p2023_p4, %p1934_p8 }
  0x47   : > { %p2030_p0 = por %p2029_p13, %p2028_p9 }
  0x48   : > { %p2026_p7 = pneg %p2025_p5 }
  0x4a   : > { %p2031_p2 = pnand %p2030_p0, %p2026_p7 }
  0x4c   : > { %2034 = shalt.err (!%p2031_p2)
}
  0x4d   : > { %1857 = dma.hbm_to_vmem [thread:$0]  (!%p2211_p6), %s233_s23, 64, %s235_s20, %s223_s1  }
  0x4e   : > { %243 = sbr.rel (%p2263_p1) target bundleno = 663 (0x297), region = 36 }
  0x53   : > { %2095 = dma.done.wait (%p66_p3), [#allocation3], 4096  }
  0x54   : > { %2097 = vsyncadd (%p66_p3), [#allocation3], 4294963200  ;;  %s250_s25 = sand.u32 1, %s2216_s9   ;;  %s2314_s13 = sand.u32 1, %s2116_s16  }
  0x55   : > { %s1821_s28 = sshll.u32 %s2314_s13, 11  ;;  %s251_s0 = scalar_lea.sflag [#allocation6], %s250_s25 }
  0x56   : > { %s2317_s8 = scalar_lea.vmem [#allocation5], %s1821_s28 }
  0x57   : > { %2099 = dma.done.wait (%p2244_p10), %s251_s0, 32832  }
  0x58   : > { %2101 = vsyncadd (%p2244_p10), %s251_s0, 4294934464  ;;  %s1822_s12 = sshll.u32 %s2314_s13, 2  ;;  %s271_s11 = scalar_lea.sflag [#allocation9], %s2314_s13 }
  0x59   : > { %s2324_s27 = scalar_lea.vmem [#allocation7], %s1822_s12  ;;  %s2327_s22 = scalar_lea.vmem [#allocation8], %s1822_s12 }
  0x5a   : > { %2103 = dma.done.wait (%p2244_p10), %s271_s11, 64  }
  0x5b   : > { %2105 = vsyncadd (%p2244_p10), %s271_s11, 4294967232  ;;  %v534_v0 = vld [vmem:[%s2317_s8 + $0x5e0] sm:$0xff]  ;;  %v2395_v62 = vld [vmem:[#allocation2 + $0x10] sm:$0xff]  ;;  %vm1493_vm12 = vcmask 1040384   ;;  %vm1495_vm13 = vcmask 1042434   ;;  %vm1497_vm15 = vcmask 1041408  }
  0x5c   : > { %v530_v1 = vld [vmem:[%s2317_s8 + $0x5c0] sm:$0xff]  ;;  %684 = vmatpush.msra.mxu2 %v534_v0  ;;  %v2397_v63 = vld [vmem:[#allocation2 + $0x18] sm:$0xff]  ;;  %v535_v0 = vld [vmem:[%s2317_s8 + $0x5e8] sm:$0xff]  ;;  %s1824_s29 = sshll.u32 %s2314_s13, 8  ;;  %s1831_s23 = sshll.u32 %s2216_s9, 5 }
  0x5d   : > { %v598_v2 = vld [vmem:[%s2317_s8 + $0x7e0] sm:$0xff]  ;;  %s3036_s20 = scalar_lea.vmem [#allocation10], %s1824_s29  ;;  %s1676_s14 = scalar_lea.hbm %s3173_s4, %s1831_s23 }
  0x5e   : > { %725 = vmatpush.msra.mxu3 %v598_v2  ;;  %v406_v3 = vld [vmem:[%s2317_s8 + $0x1e0] sm:$0xff]  ;;  %685 = vmatpush.msra.mxu2 %v530_v1  ;;  %v599_v1 = vld [vmem:[%s2317_s8 + $0x7e8] sm:$0xff]  ;;  %s1677_s24 = sshll.u32 %s3036_s20, 4  ;;  %s1679_s6 = sshll.u32 %s1676_s14, 4  ;;  %s1678_s24 = int_to_ptr.vmem [resolvable:$true] %s1677_s24  ;;  %s1680_s6 = int_to_ptr.hbm [resolvable:$true] %s1679_s6 }
  0x5f   : > { %v470_v4 = vld [vmem:[%s2317_s8 + $0x3e0] sm:$0xff]  ;;  %602 = vmatpush.msra.mxu0 %v406_v3  ;;  %s1665_s10 = scalar_lea.sflag [#allocation4], %s2314_s13  ;;  %s2064_s26 = sshra.s32 %s1680_s6, 4  ;;  %s2065_s26 = int_to_ptr.hbm [resolvable:$true] %s2064_s26 }
  0x60   : > { %v526_v5 = vld [vmem:[%s2317_s8 + $0x5a0] sm:$0xff]  ;;  %643 = vmatpush.msra.mxu1 %v470_v4  ;;  %s2066_s7 = scalar_lea.hbm %s2065_s26, 256  ;;  %s2070_s28 = scalar_lea.hbm %s3173_s4, 512 }
  0x61   : > { %v594_v6 = vld [vmem:[%s2317_s8 + $0x7c0] sm:$0xff]  ;;  %686 = vmatpush.msra.mxu2 %v526_v5  ;;  %v2407_v5 = vld [vmem:[#allocation2 + $0x8] sm:$0xff]  ;;  %p2067_p6 = scmp.ne.s32.totalorder %s2065_s26, %s2066_s7  ;;  %p2071_p10 = scmp.lt.s32.totalorder %s2065_s26, %s3173_s4 }
  0x62   : > { %v402_v7 = vld [vmem:[%s2317_s8 + $0x1c0] sm:$0xff]  ;;  %726 = vmatpush.msra.mxu3 %v594_v6  ;;  %v407_v6 = vld [vmem:[%s2317_s8 + $0x1e8] sm:$0xff]  ;;  %p2072_p1 = scmp.lt.s32.totalorder %s2070_s28, %s2066_s7 }
  0x63   : > { %v466_v8 = vld [vmem:[%s2317_s8 + $0x3c0] sm:$0xff]  ;;  %603 = vmatpush.msra.mxu0 %v402_v7  ;;  %v471_v7 = vld [vmem:[%s2317_s8 + $0x3e8] sm:$0xff]  ;;  %p2068_p8 = pnand %p2067_p6, %p2251_p11 }
  0x64   : > { %v590_v9 = vld [vmem:[%s2317_s8 + $0x7a0] sm:$0xff]  ;;  %644 = vmatpush.msra.mxu1 %v466_v8  ;;  %v531_v8 = vld [vmem:[%s2317_s8 + $0x5c8] sm:$0xff]  ;;  %p2073_p4 = por %p2072_p1, %p2071_p10 }
  0x65   : > { %v398_v10 = vld [vmem:[%s2317_s8 + $0x1a0] sm:$0xff]  ;;  %727 = vmatpush.msra.mxu3 %v590_v9  ;;  %v595_v9 = vld [vmem:[%s2317_s8 + $0x7c8] sm:$0xff]  ;;  %p2069_p3 = pneg %p2068_p8 }
  0x66   : > { %v522_v11 = vld [vmem:[%s2317_s8 + $0x580] sm:$0xff]  ;;  %604 = vmatpush.msra.mxu0 %v398_v10  ;;  %v403_v10 = vld [vmem:[%s2317_s8 + $0x1c8] sm:$0xff] }
  0x67   : > { %v462_v12 = vld [vmem:[%s2317_s8 + $0x3a0] sm:$0xff]  ;;  %687 = vmatpush.msra.mxu2 %v522_v11  ;;  %v467_v11 = vld [vmem:[%s2317_s8 + $0x3c8] sm:$0xff]  ;;  %p2074_p5 = pnand %p2073_p4, %p2069_p3 }
  0x68   : > { %v586_v13 = vld [vmem:[%s2317_s8 + $0x780] sm:$0xff]  ;;  %645 = vmatpush.msra.mxu1 %v462_v12  ;;  %v527_v12 = vld [vmem:[%s2317_s8 + $0x5a8] sm:$0xff] }
  0x69   : > { %v394_v14 = vld [vmem:[%s2317_s8 + $0x180] sm:$0xff]  ;;  %728 = vmatpush.msra.mxu3 %v586_v13  ;;  %v591_v13 = vld [vmem:[%s2317_s8 + $0x7a8] sm:$0xff] }
  0x6a   : > { %v458_v15 = vld [vmem:[%s2317_s8 + $0x380] sm:$0xff]  ;;  %605 = vmatpush.msra.mxu0 %v394_v14  ;;  %v2419_v14 = vld [vmem:[#allocation2 + $0x30] sm:$0xff] }
  0x6b   : > { %v518_v16 = vld [vmem:[%s2317_s8 + $0x560] sm:$0xff]  ;;  %646 = vmatpush.msra.mxu1 %v458_v15  ;;  %v2421_v15 = vld [vmem:[#allocation2 + $0x38] sm:$0xff] }
  0x6c   : > { %v582_v17 = vld [vmem:[%s2317_s8 + $0x760] sm:$0xff]  ;;  %688 = vmatpush.msra.mxu2 %v518_v16  ;;  %v399_v16 = vld [vmem:[%s2317_s8 + $0x1a8] sm:$0xff] }
  0x6d   : > { %v390_v18 = vld [vmem:[%s2317_s8 + $0x160] sm:$0xff]  ;;  %729 = vmatpush.msra.mxu3 %v582_v17  ;;  %v463_v17 = vld [vmem:[%s2317_s8 + $0x3a8] sm:$0xff] }
  0x6e   : > { %v454_v19 = vld [vmem:[%s2317_s8 + $0x360] sm:$0xff]  ;;  %606 = vmatpush.msra.mxu0 %v390_v18  ;;  %v523_v18 = vld [vmem:[%s2317_s8 + $0x588] sm:$0xff] }
  0x6f   : > { %v514_v20 = vld [vmem:[%s2317_s8 + $0x540] sm:$0xff]  ;;  %647 = vmatpush.msra.mxu1 %v454_v19  ;;  %v587_v19 = vld [vmem:[%s2317_s8 + $0x788] sm:$0xff] }
  0x70   : > { %v578_v21 = vld [vmem:[%s2317_s8 + $0x740] sm:$0xff]  ;;  %689 = vmatpush.msra.mxu2 %v514_v20 }
  0x71   : > { %v386_v22 = vld [vmem:[%s2317_s8 + $0x140] sm:$0xff]  ;;  %730 = vmatpush.msra.mxu3 %v578_v21  ;;  %v2431_v21 = vld [vmem:[#allocation2 + $0x28] sm:$0xff] }
  0x72   : > { %v450_v23 = vld [vmem:[%s2317_s8 + $0x340] sm:$0xff]  ;;  %607 = vmatpush.msra.mxu0 %v386_v22  ;;  %v395_v22 = vld [vmem:[%s2317_s8 + $0x188] sm:$0xff] }
  0x73   : > { %v510_v24 = vld [vmem:[%s2317_s8 + $0x520] sm:$0xff]  ;;  %648 = vmatpush.msra.mxu1 %v450_v23  ;;  %v459_v23 = vld [vmem:[%s2317_s8 + $0x388] sm:$0xff] }
  0x74   : > { %v574_v25 = vld [vmem:[%s2317_s8 + $0x720] sm:$0xff]  ;;  %690 = vmatpush.msra.mxu2 %v510_v24  ;;  %v519_v24 = vld [vmem:[%s2317_s8 + $0x568] sm:$0xff] }
  0x75   : > { %v382_v26 = vld [vmem:[%s2317_s8 + $0x120] sm:$0xff]  ;;  %731 = vmatpush.msra.mxu3 %v574_v25  ;;  %v583_v25 = vld [vmem:[%s2317_s8 + $0x768] sm:$0xff] }
  0x76   : > { %v446_v27 = vld [vmem:[%s2317_s8 + $0x320] sm:$0xff]  ;;  %608 = vmatpush.msra.mxu0 %v382_v26  ;;  %v391_v26 = vld [vmem:[%s2317_s8 + $0x168] sm:$0xff] }
  0x77   : > { %v506_v28 = vld [vmem:[%s2317_s8 + $0x500] sm:$0xff]  ;;  %649 = vmatpush.msra.mxu1 %v446_v27  ;;  %v455_v27 = vld [vmem:[%s2317_s8 + $0x368] sm:$0xff] }
  0x78   : > { %v570_v29 = vld [vmem:[%s2317_s8 + $0x700] sm:$0xff]  ;;  %691 = vmatpush.msra.mxu2 %v506_v28  ;;  %v515_v28 = vld [vmem:[%s2317_s8 + $0x548] sm:$0xff] }
  0x79   : > { %v378_v30 = vld [vmem:[%s2317_s8 + $0x100] sm:$0xff]  ;;  %732 = vmatpush.msra.mxu3 %v570_v29  ;;  %v579_v29 = vld [vmem:[%s2317_s8 + $0x748] sm:$0xff] }
  0x7a   : > { %v442_v31 = vld [vmem:[%s2317_s8 + $0x300] sm:$0xff]  ;;  %609 = vmatpush.msra.mxu0 %v378_v30  ;;  %v2443_v30 = vld [vmem:[#allocation2 + $0x50] sm:$0xff] }
  0x7b   : > { %v502_v32 = vld [vmem:[%s2317_s8 + $0x4e0] sm:$0xff]  ;;  %650 = vmatpush.msra.mxu1 %v442_v31  ;;  %v2445_v31 = vld [vmem:[#allocation2 + $0x58] sm:$0xff] }
  0x7c   : > { %v566_v33 = vld [vmem:[%s2317_s8 + $0x6e0] sm:$0xff]  ;;  %692 = vmatpush.msra.mxu2 %v502_v32  ;;  %v387_v32 = vld [vmem:[%s2317_s8 + $0x148] sm:$0xff] }
  0x7d   : > { %v374_v34 = vld [vmem:[%s2317_s8 + $0xe0] sm:$0xff]  ;;  %733 = vmatpush.msra.mxu3 %v566_v33  ;;  %v451_v33 = vld [vmem:[%s2317_s8 + $0x348] sm:$0xff] }
  0x7e   : > { %v438_v35 = vld [vmem:[%s2317_s8 + $0x2e0] sm:$0xff]  ;;  %610 = vmatpush.msra.mxu0 %v374_v34  ;;  %v511_v34 = vld [vmem:[%s2317_s8 + $0x528] sm:$0xff] }
  0x7f   : > { %v498_v36 = vld [vmem:[%s2317_s8 + $0x4c0] sm:$0xff]  ;;  %651 = vmatpush.msra.mxu1 %v438_v35  ;;  %v575_v35 = vld [vmem:[%s2317_s8 + $0x728] sm:$0xff] }
  0x80   : > { %v562_v37 = vld [vmem:[%s2317_s8 + $0x6c0] sm:$0xff]  ;;  %693 = vmatpush.msra.mxu2 %v498_v36 }
  0x81   : > { %v370_v38 = vld [vmem:[%s2317_s8 + $0xc0] sm:$0xff]  ;;  %734 = vmatpush.msra.mxu3 %v562_v37  ;;  %v2455_v37 = vld [vmem:[#allocation2 + $0x48] sm:$0xff] }
  0x82   : > { %v434_v39 = vld [vmem:[%s2317_s8 + $0x2c0] sm:$0xff]  ;;  %611 = vmatpush.msra.mxu0 %v370_v38  ;;  %v383_v38 = vld [vmem:[%s2317_s8 + $0x128] sm:$0xff] }
  0x83   : > { %v494_v40 = vld [vmem:[%s2317_s8 + $0x4a0] sm:$0xff]  ;;  %652 = vmatpush.msra.mxu1 %v434_v39  ;;  %v447_v39 = vld [vmem:[%s2317_s8 + $0x328] sm:$0xff] }
  0x84   : > { %v558_v41 = vld [vmem:[%s2317_s8 + $0x6a0] sm:$0xff]  ;;  %694 = vmatpush.msra.mxu2 %v494_v40  ;;  %v507_v40 = vld [vmem:[%s2317_s8 + $0x508] sm:$0xff] }
  0x85   : > { %v366_v42 = vld [vmem:[%s2317_s8 + $0xa0] sm:$0xff]  ;;  %735 = vmatpush.msra.mxu3 %v558_v41  ;;  %v571_v41 = vld [vmem:[%s2317_s8 + $0x708] sm:$0xff] }
  0x86   : > { %v430_v43 = vld [vmem:[%s2317_s8 + $0x2a0] sm:$0xff]  ;;  %612 = vmatpush.msra.mxu0 %v366_v42  ;;  %v379_v42 = vld [vmem:[%s2317_s8 + $0x108] sm:$0xff] }
  0x87   : > { %v490_v44 = vld [vmem:[%s2317_s8 + $0x480] sm:$0xff]  ;;  %653 = vmatpush.msra.mxu1 %v430_v43  ;;  %v443_v43 = vld [vmem:[%s2317_s8 + $0x308] sm:$0xff] }
  0x88   : > { %v554_v45 = vld [vmem:[%s2317_s8 + $0x680] sm:$0xff]  ;;  %695 = vmatpush.msra.mxu2 %v490_v44  ;;  %v503_v44 = vld [vmem:[%s2317_s8 + $0x4e8] sm:$0xff] }
  0x89   : > { %v362_v46 = vld [vmem:[%s2317_s8 + $0x80] sm:$0xff]  ;;  %736 = vmatpush.msra.mxu3 %v554_v45  ;;  %v567_v45 = vld [vmem:[%s2317_s8 + $0x6e8] sm:$0xff] }
  0x8a   : > { %v426_v47 = vld [vmem:[%s2317_s8 + $0x280] sm:$0xff]  ;;  %613 = vmatpush.msra.mxu0 %v362_v46  ;;  %v2467_v46 = vld [vmem:[#allocation2 + $0x70] sm:$0xff] }
  0x8b   : > { %v486_v48 = vld [vmem:[%s2317_s8 + $0x460] sm:$0xff]  ;;  %654 = vmatpush.msra.mxu1 %v426_v47  ;;  %v2469_v47 = vld [vmem:[#allocation2 + $0x78] sm:$0xff] }
  0x8c   : > { %v550_v49 = vld [vmem:[%s2317_s8 + $0x660] sm:$0xff]  ;;  %696 = vmatpush.msra.mxu2 %v486_v48  ;;  %v375_v48 = vld [vmem:[%s2317_s8 + $0xe8] sm:$0xff] }
  0x8d   : > { %v358_v50 = vld [vmem:[%s2317_s8 + $0x60] sm:$0xff]  ;;  %737 = vmatpush.msra.mxu3 %v550_v49  ;;  %v439_v49 = vld [vmem:[%s2317_s8 + $0x2e8] sm:$0xff] }
  0x8e   : > { %v422_v51 = vld [vmem:[%s2317_s8 + $0x260] sm:$0xff]  ;;  %614 = vmatpush.msra.mxu0 %v358_v50  ;;  %v499_v50 = vld [vmem:[%s2317_s8 + $0x4c8] sm:$0xff] }
  0x8f   : > { %v482_v52 = vld [vmem:[%s2317_s8 + $0x440] sm:$0xff]  ;;  %655 = vmatpush.msra.mxu1 %v422_v51  ;;  %v563_v51 = vld [vmem:[%s2317_s8 + $0x6c8] sm:$0xff] }
  0x90   : > { %v546_v53 = vld [vmem:[%s2317_s8 + $0x640] sm:$0xff]  ;;  %697 = vmatpush.msra.mxu2 %v482_v52 }
  0x91   : > { %v354_v54 = vld [vmem:[%s2317_s8 + $0x40] sm:$0xff]  ;;  %738 = vmatpush.msra.mxu3 %v546_v53  ;;  %v2479_v53 = vld [vmem:[#allocation2 + $0x68] sm:$0xff] }
  0x92   : > { %v418_v55 = vld [vmem:[%s2317_s8 + $0x240] sm:$0xff]  ;;  %615 = vmatpush.msra.mxu0 %v354_v54  ;;  %v371_v54 = vld [vmem:[%s2317_s8 + $0xc8] sm:$0xff] }
  0x93   : > { %v478_v56 = vld [vmem:[%s2317_s8 + $0x420] sm:$0xff]  ;;  %656 = vmatpush.msra.mxu1 %v418_v55  ;;  %v435_v55 = vld [vmem:[%s2317_s8 + $0x2c8] sm:$0xff] }
  0x94   : > { %v542_v57 = vld [vmem:[%s2317_s8 + $0x620] sm:$0xff]  ;;  %698 = vmatpush.msra.mxu2 %v478_v56  ;;  %v495_v56 = vld [vmem:[%s2317_s8 + $0x4a8] sm:$0xff] }
  0x95   : > { %v350_v58 = vld [vmem:[%s2317_s8 + $0x20] sm:$0xff]  ;;  %739 = vmatpush.msra.mxu3 %v542_v57  ;;  %v559_v57 = vld [vmem:[%s2317_s8 + $0x6a8] sm:$0xff] }
  0x96   : > { %v414_v59 = vld [vmem:[%s2317_s8 + $0x220] sm:$0xff]  ;;  %616 = vmatpush.msra.mxu0 %v350_v58  ;;  %v367_v58 = vld [vmem:[%s2317_s8 + $0xa8] sm:$0xff] }
  0x97   : > { %v474_v60 = vld [vmem:[%s2317_s8 + $0x400] sm:$0xff]  ;;  %657 = vmatpush.msra.mxu1 %v414_v59  ;;  %v431_v59 = vld [vmem:[%s2317_s8 + $0x2a8] sm:$0xff] }
  0x98   : > { %v538_v61 = vld [vmem:[%s2317_s8 + $0x600] sm:$0xff]  ;;  %699 = vmatpush.msra.mxu2 %v474_v60  ;;  %v491_v60 = vld [vmem:[%s2317_s8 + $0x488] sm:$0xff] }
  0x99   : > { %740 = vmatpush.msra.mxu3 %v538_v61  ;;  %v346_v2 = vld [vmem:[%s2317_s8] sm:$0xff]  ;;  %700 = vmatmul.f32.vlgmr.msra.gmra.mxu2 %v2395_v62  ;;  %v555_v61 = vld [vmem:[%s2317_s8 + $0x688] sm:$0xff] }
  0x9a   : > { %v410_v3 = vld [vmem:[%s2317_s8 + $0x200] sm:$0xff]  ;;  %741 = vmatmul.f32.vlgmr.msra.gmra.mxu3 %v2397_v63  ;;  %848 = vmatpush.msrb.mxu2 %v535_v0  ;;  %v2491_v0 = vld [vmem:[#allocation2 + $0x90] sm:$0xff] }
  0x9b   : > { %v2405_v4 = vld [vmem:[#allocation2] sm:$0xff]  ;;  %889 = vmatpush.msrb.mxu3 %v599_v1  ;;  %617 = vmatpush.msra.mxu0 %v346_v2  ;;  %v2493_v1 = vld [vmem:[#allocation2 + $0x98] sm:$0xff]  ;;  %v363_v2 = vld [vmem:[%s2317_s8 + $0x88] sm:$0xff] }
  0x9c   : > { %658 = vmatpush.msra.mxu1 %v410_v3  ;;  %618 = vmatmul.f32.vlgmr.msra.gmra.mxu0 %v2405_v4  ;;  %v2429_v20 = vld [vmem:[#allocation2 + $0x20] sm:$0xff]  ;;  %v427_v3 = vld [vmem:[%s2317_s8 + $0x288] sm:$0xff] }
  0x9d   : > { %659 = vmatmul.f32.vlgmr.msra.gmra.mxu1 %v2407_v5  ;;  %766 = vmatpush.msrb.mxu0 %v407_v6  ;;  %v2453_v36 = vld [vmem:[#allocation2 + $0x40] sm:$0xff]  ;;  %v487_v6 = vld [vmem:[%s2317_s8 + $0x468] sm:$0xff] }
  0x9e   : > { %807 = vmatpush.msrb.mxu1 %v471_v7  ;;  %849 = vmatpush.msrb.mxu2 %v531_v8  ;;  %v2477_v52 = vld [vmem:[#allocation2 + $0x60] sm:$0xff]  ;;  %v551_v7 = vld [vmem:[%s2317_s8 + $0x668] sm:$0xff] }
  0x9f   : > { %890 = vmatpush.msrb.mxu3 %v595_v9  ;;  %767 = vmatpush.msrb.mxu0 %v403_v10  ;;  %v2501_v8 = vld [vmem:[#allocation2 + $0x80] sm:$0xff]  ;;  %v2503_v9 = vld [vmem:[#allocation2 + $0x88] sm:$0xff] }
  0xa0   : > { %808 = vmatpush.msrb.mxu1 %v467_v11  ;;  %850 = vmatpush.msrb.mxu2 %v527_v12  ;;  %v359_v10 = vld [vmem:[%s2317_s8 + $0x68] sm:$0xff] }
  0xa1   : > { %891 = vmatpush.msrb.mxu3 %v591_v13  ;;  %703 = vmatmul.f32.gmra.mxu2 %v2419_v14  ;;  %v423_v11 = vld [vmem:[%s2317_s8 + $0x268] sm:$0xff] }
  0xa2   : > { %744 = vmatmul.f32.gmra.mxu3 %v2421_v15  ;;  %768 = vmatpush.msrb.mxu0 %v399_v16  ;;  %v483_v12 = vld [vmem:[%s2317_s8 + $0x448] sm:$0xff] }
  0xa3   : > { %809 = vmatpush.msrb.mxu1 %v463_v17  ;;  %851 = vmatpush.msrb.mxu2 %v523_v18  ;;  %v547_v13 = vld [vmem:[%s2317_s8 + $0x648] sm:$0xff] }
  0xa4   : > { %892 = vmatpush.msrb.mxu3 %v587_v19  ;;  %621 = vmatmul.f32.gmra.mxu0 %v2429_v20  ;;  %v355_v16 = vld [vmem:[%s2317_s8 + $0x48] sm:$0xff] }
  0xa5   : > { %662 = vmatmul.f32.gmra.mxu1 %v2431_v21  ;;  %769 = vmatpush.msrb.mxu0 %v395_v22  ;;  %v419_v17 = vld [vmem:[%s2317_s8 + $0x248] sm:$0xff]  ;;  %v2515_v22 = vld [vmem:[#allocation2 + $0xb0] sm:$0xff] }
  0xa6   : > { %810 = vmatpush.msrb.mxu1 %v459_v23  ;;  %852 = vmatpush.msrb.mxu2 %v519_v24  ;;  %v479_v18 = vld [vmem:[%s2317_s8 + $0x428] sm:$0xff]  ;;  %v2517_v23 = vld [vmem:[#allocation2 + $0xb8] sm:$0xff] }
  0xa7   : > { %893 = vmatpush.msrb.mxu3 %v583_v25  ;;  %770 = vmatpush.msrb.mxu0 %v391_v26  ;;  %v543_v19 = vld [vmem:[%s2317_s8 + $0x628] sm:$0xff] }
  0xa8   : > { %811 = vmatpush.msrb.mxu1 %v455_v27  ;;  %853 = vmatpush.msrb.mxu2 %v515_v28  ;;  %v351_v24 = vld [vmem:[%s2317_s8 + $0x28] sm:$0xff]  ;;  %v2525_v28 = vld [vmem:[#allocation2 + $0xa0] sm:$0xff] }
  0xa9   : > { %894 = vmatpush.msrb.mxu3 %v579_v29  ;;  %706 = vmatmul.f32.gmra.mxu2 %v2443_v30  ;;  %v415_v25 = vld [vmem:[%s2317_s8 + $0x228] sm:$0xff] }
  0xaa   : > { %747 = vmatmul.f32.gmra.mxu3 %v2445_v31  ;;  %771 = vmatpush.msrb.mxu0 %v387_v32  ;;  %v475_v26 = vld [vmem:[%s2317_s8 + $0x408] sm:$0xff] }
  0xab   : > { %812 = vmatpush.msrb.mxu1 %v451_v33  ;;  %854 = vmatpush.msrb.mxu2 %v511_v34  ;;  %v539_v27 = vld [vmem:[%s2317_s8 + $0x608] sm:$0xff]  ;;  %v536_v34 = vld [vmem:[%s2317_s8 + $0x5f0] sm:$0xff] }
  0xac   : > { %895 = vmatpush.msrb.mxu3 %v575_v35  ;;  %624 = vmatmul.f32.gmra.mxu0 %v2453_v36  ;;  %v2527_v29 = vld [vmem:[#allocation2 + $0xa8] sm:$0xff]  ;;  %v600_v35 = vld [vmem:[%s2317_s8 + $0x7f0] sm:$0xff] }
  0xad   : > { %665 = vmatmul.f32.gmra.mxu1 %v2455_v37  ;;  %772 = vmatpush.msrb.mxu0 %v383_v38  ;;  %v347_v32 = vld [vmem:[%s2317_s8 + $0x8] sm:$0xff]  ;;  %v408_v38 = vld [vmem:[%s2317_s8 + $0x1f0] sm:$0xff] }
  0xae   : > { %813 = vmatpush.msrb.mxu1 %v447_v39  ;;  %855 = vmatpush.msrb.mxu2 %v507_v40  ;;  %v411_v33 = vld [vmem:[%s2317_s8 + $0x208] sm:$0xff]  ;;  %v472_v39 = vld [vmem:[%s2317_s8 + $0x3f0] sm:$0xff] }
  0xaf   : > { %896 = vmatpush.msrb.mxu3 %v571_v41  ;;  %773 = vmatpush.msrb.mxu0 %v379_v42  ;;  %v532_v40 = vld [vmem:[%s2317_s8 + $0x5d0] sm:$0xff] }
  0xb0   : > { %814 = vmatpush.msrb.mxu1 %v443_v43  ;;  %856 = vmatpush.msrb.mxu2 %v503_v44  ;;  %v596_v41 = vld [vmem:[%s2317_s8 + $0x7d0] sm:$0xff]  ;;  %v2541_v43 = vld [vmem:[#allocation2 + $0xd8] sm:$0xff] }
  0xb1   : > { %897 = vmatpush.msrb.mxu3 %v567_v45  ;;  %709 = vmatmul.f32.gmra.mxu2 %v2467_v46  ;;  %v2539_v42 = vld [vmem:[#allocation2 + $0xd0] sm:$0xff] }
  0xb2   : > { %750 = vmatmul.f32.gmra.mxu3 %v2469_v47  ;;  %774 = vmatpush.msrb.mxu0 %v375_v48  ;;  %v404_v44 = vld [vmem:[%s2317_s8 + $0x1d0] sm:$0xff] }
  0xb3   : > { %815 = vmatpush.msrb.mxu1 %v439_v49  ;;  %857 = vmatpush.msrb.mxu2 %v499_v50  ;;  %v468_v45 = vld [vmem:[%s2317_s8 + $0x3d0] sm:$0xff]  ;;  %v2549_v50 = vld [vmem:[#allocation2 + $0xc0] sm:$0xff] }
  0xb4   : > { %898 = vmatpush.msrb.mxu3 %v563_v51  ;;  %627 = vmatmul.f32.gmra.mxu0 %v2477_v52  ;;  %v528_v48 = vld [vmem:[%s2317_s8 + $0x5b0] sm:$0xff]  ;;  %v2551_v51 = vld [vmem:[#allocation2 + $0xc8] sm:$0xff] }
  0xb5   : > { %668 = vmatmul.f32.gmra.mxu1 %v2479_v53  ;;  %775 = vmatpush.msrb.mxu0 %v371_v54  ;;  %v592_v49 = vld [vmem:[%s2317_s8 + $0x7b0] sm:$0xff] }
  0xb6   : > { %816 = vmatpush.msrb.mxu1 %v435_v55  ;;  %858 = vmatpush.msrb.mxu2 %v495_v56  ;;  %v400_v54 = vld [vmem:[%s2317_s8 + $0x1b0] sm:$0xff] }
  0xb7   : > { %899 = vmatpush.msrb.mxu3 %v559_v57  ;;  %776 = vmatpush.msrb.mxu0 %v367_v58  ;;  %v464_v55 = vld [vmem:[%s2317_s8 + $0x3b0] sm:$0xff] }
  0xb8   : > { %817 = vmatpush.msrb.mxu1 %v431_v59  ;;  %859 = vmatpush.msrb.mxu2 %v491_v60  ;;  %v524_v56 = vld [vmem:[%s2317_s8 + $0x590] sm:$0xff] }
  0xb9   : > { %900 = vmatpush.msrb.mxu3 %v555_v61  ;;  %712 = vmatmul.f32.gmra.mxu2 %v2491_v0  ;;  %v588_v57 = vld [vmem:[%s2317_s8 + $0x790] sm:$0xff] }
  0xba   : > { %753 = vmatmul.f32.gmra.mxu3 %v2493_v1  ;;  %777 = vmatpush.msrb.mxu0 %v363_v2  ;;  %v396_v58 = vld [vmem:[%s2317_s8 + $0x190] sm:$0xff] }
  0xbb   : > { %818 = vmatpush.msrb.mxu1 %v427_v3  ;;  %860 = vmatpush.msrb.mxu2 %v487_v6  ;;  %v460_v59 = vld [vmem:[%s2317_s8 + $0x390] sm:$0xff]  ;;  %v2565_v3 = vld [vmem:[#allocation2 + $0xf8] sm:$0xff] }
  0xbc   : > { %901 = vmatpush.msrb.mxu3 %v551_v7  ;;  %630 = vmatmul.f32.gmra.mxu0 %v2501_v8  ;;  %v520_v60 = vld [vmem:[%s2317_s8 + $0x570] sm:$0xff] }
  0xbd   : > { %671 = vmatmul.f32.gmra.mxu1 %v2503_v9  ;;  %778 = vmatpush.msrb.mxu0 %v359_v10  ;;  %v584_v61 = vld [vmem:[%s2317_s8 + $0x770] sm:$0xff] }
  0xbe   : > { %819 = vmatpush.msrb.mxu1 %v423_v11  ;;  %861 = vmatpush.msrb.mxu2 %v483_v12  ;;  %v2563_v2 = vld [vmem:[#allocation2 + $0xf0] sm:$0xff]  ;;  %v2573_v12 = vld [vmem:[#allocation2 + $0xe0] sm:$0xff] }
  0xbf   : > { %902 = vmatpush.msrb.mxu3 %v547_v13  ;;  %779 = vmatpush.msrb.mxu0 %v355_v16  ;;  %v392_v6 = vld [vmem:[%s2317_s8 + $0x170] sm:$0xff]  ;;  %v2575_v13 = vld [vmem:[#allocation2 + $0xe8] sm:$0xff] }
  0xc0   : > { %820 = vmatpush.msrb.mxu1 %v419_v17  ;;  %862 = vmatpush.msrb.mxu2 %v479_v18  ;;  %v456_v7 = vld [vmem:[%s2317_s8 + $0x370] sm:$0xff] }
  0xc1   : > { %903 = vmatpush.msrb.mxu3 %v543_v19  ;;  %715 = vmatmul.f32.gmra.mxu2 %v2515_v22  ;;  %v516_v10 = vld [vmem:[%s2317_s8 + $0x550] sm:$0xff] }
  0xc2   : > { %756 = vmatmul.f32.gmra.mxu3 %v2517_v23  ;;  %780 = vmatpush.msrb.mxu0 %v351_v24  ;;  %v580_v11 = vld [vmem:[%s2317_s8 + $0x750] sm:$0xff] }
  0xc3   : > { %821 = vmatpush.msrb.mxu1 %v415_v25  ;;  %863 = vmatpush.msrb.mxu2 %v475_v26  ;;  %v388_v16 = vld [vmem:[%s2317_s8 + $0x150] sm:$0xff] }
  0xc4   : > { %904 = vmatpush.msrb.mxu3 %v539_v27  ;;  %633 = vmatmul.f32.gmra.mxu0 %v2525_v28  ;;  %v452_v17 = vld [vmem:[%s2317_s8 + $0x350] sm:$0xff] }
  0xc5   : > { %674 = vmatmul.f32.gmra.mxu1 %v2527_v29  ;;  %781 = vmatpush.msrb.mxu0 %v347_v32  ;;  %v512_v18 = vld [vmem:[%s2317_s8 + $0x530] sm:$0xff] }
  0xc6   : > { %822 = vmatpush.msrb.mxu1 %v411_v33  ;;  %1012 = vmatpush.msra.mxu2 %v536_v34  ;;  %v576_v19 = vld [vmem:[%s2317_s8 + $0x730] sm:$0xff] }
  0xc7   : > { %1053 = vmatpush.msra.mxu3 %v600_v35  ;;  %930 = vmatpush.msra.mxu0 %v408_v38  ;;  %v384_v24 = vld [vmem:[%s2317_s8 + $0x130] sm:$0xff] }
  0xc8   : > { %971 = vmatpush.msra.mxu1 %v472_v39  ;;  %1013 = vmatpush.msra.mxu2 %v532_v40  ;;  %v448_v25 = vld [vmem:[%s2317_s8 + $0x330] sm:$0xff] }
  0xc9   : > { %1054 = vmatpush.msra.mxu3 %v596_v41  ;;  %718 = vmatmul.f32.gmra.mxu2 %v2539_v42  ;;  %v508_v26 = vld [vmem:[%s2317_s8 + $0x510] sm:$0xff] }
  0xca   : > { %759 = vmatmul.f32.gmra.mxu3 %v2541_v43  ;;  %931 = vmatpush.msra.mxu0 %v404_v44  ;;  %v572_v27 = vld [vmem:[%s2317_s8 + $0x710] sm:$0xff] }
  0xcb   : > { %972 = vmatpush.msra.mxu1 %v468_v45  ;;  %1014 = vmatpush.msra.mxu2 %v528_v48  ;;  %v380_v32 = vld [vmem:[%s2317_s8 + $0x110] sm:$0xff] }
  0xcc   : > { %1055 = vmatpush.msra.mxu3 %v592_v49  ;;  %636 = vmatmul.f32.gmra.mxu0 %v2549_v50  ;;  %v444_v33 = vld [vmem:[%s2317_s8 + $0x310] sm:$0xff] }
  0xcd   : > { %677 = vmatmul.f32.gmra.mxu1 %v2551_v51  ;;  %932 = vmatpush.msra.mxu0 %v400_v54  ;;  %v504_v34 = vld [vmem:[%s2317_s8 + $0x4f0] sm:$0xff] }
  0xce   : > { %973 = vmatpush.msra.mxu1 %v464_v55  ;;  %1015 = vmatpush.msra.mxu2 %v524_v56  ;;  %v568_v35 = vld [vmem:[%s2317_s8 + $0x6f0] sm:$0xff] }
  0xcf   : > { %1056 = vmatpush.msra.mxu3 %v588_v57  ;;  %933 = vmatpush.msra.mxu0 %v396_v58  ;;  %v376_v38 = vld [vmem:[%s2317_s8 + $0xf0] sm:$0xff] }
  0xd0   : > { %974 = vmatpush.msra.mxu1 %v460_v59  ;;  %1016 = vmatpush.msra.mxu2 %v520_v60  ;;  %v440_v39 = vld [vmem:[%s2317_s8 + $0x2f0] sm:$0xff] }
  0xd1   : > { %1057 = vmatpush.msra.mxu3 %v584_v61  ;;  %721 = vmatmul.f32.gmra.mxu2 %v2563_v2  ;;  %v500_v40 = vld [vmem:[%s2317_s8 + $0x4d0] sm:$0xff] }
  0xd2   : > { %762 = vmatmul.f32.gmra.mxu3 %v2565_v3  ;;  %934 = vmatpush.msra.mxu0 %v392_v6  ;;  %v564_v41 = vld [vmem:[%s2317_s8 + $0x6d0] sm:$0xff] }
  0xd3   : > { %975 = vmatpush.msra.mxu1 %v456_v7  ;;  %1017 = vmatpush.msra.mxu2 %v516_v10  ;;  %v372_v44 = vld [vmem:[%s2317_s8 + $0xd0] sm:$0xff] }
  0xd4   : > { %1058 = vmatpush.msra.mxu3 %v580_v11  ;;  %639 = vmatmul.f32.gmra.mxu0 %v2573_v12  ;;  %v436_v45 = vld [vmem:[%s2317_s8 + $0x2d0] sm:$0xff] }
  0xd5   : > { %680 = vmatmul.f32.gmra.mxu1 %v2575_v13  ;;  %935 = vmatpush.msra.mxu0 %v388_v16  ;;  %v496_v48 = vld [vmem:[%s2317_s8 + $0x4b0] sm:$0xff] }
  0xd6   : > { %976 = vmatpush.msra.mxu1 %v452_v17  ;;  %1018 = vmatpush.msra.mxu2 %v512_v18  ;;  %v560_v49 = vld [vmem:[%s2317_s8 + $0x6b0] sm:$0xff] }
  0xd7   : > { %1059 = vmatpush.msra.mxu3 %v576_v19  ;;  %936 = vmatpush.msra.mxu0 %v384_v24  ;;  %v368_v54 = vld [vmem:[%s2317_s8 + $0xb0] sm:$0xff] }
  0xd8   : > { %977 = vmatpush.msra.mxu1 %v448_v25  ;;  %1019 = vmatpush.msra.mxu2 %v508_v26  ;;  %v432_v55 = vld [vmem:[%s2317_s8 + $0x2b0] sm:$0xff] }
  0xd9   : > { %1060 = vmatpush.msra.mxu3 %v572_v27  ;;  %864 = vmatmul.f32.vlgmr.msrb.gmra.mxu2 %v2395_v62  ;;  %v492_v56 = vld [vmem:[%s2317_s8 + $0x490] sm:$0xff] }
  0xda   : > { %905 = vmatmul.f32.vlgmr.msrb.gmra.mxu3 %v2397_v63  ;;  %937 = vmatpush.msra.mxu0 %v380_v32  ;;  %v556_v57 = vld [vmem:[%s2317_s8 + $0x690] sm:$0xff] }
  0xdb   : > { %978 = vmatpush.msra.mxu1 %v444_v33  ;;  %1020 = vmatpush.msra.mxu2 %v504_v34  ;;  %v364_v58 = vld [vmem:[%s2317_s8 + $0x90] sm:$0xff]  ;;  %v537_v34 = vld [vmem:[%s2317_s8 + $0x5f8] sm:$0xff] }
  0xdc   : > { %1061 = vmatpush.msra.mxu3 %v568_v35  ;;  %782 = vmatmul.f32.vlgmr.msrb.gmra.mxu0 %v2405_v4  ;;  %v428_v59 = vld [vmem:[%s2317_s8 + $0x290] sm:$0xff]  ;;  %v601_v35 = vld [vmem:[%s2317_s8 + $0x7f8] sm:$0xff] }
  0xdd   : > { %823 = vmatmul.f32.vlgmr.msrb.gmra.mxu1 %v2407_v5  ;;  %938 = vmatpush.msra.mxu0 %v376_v38  ;;  %v488_v60 = vld [vmem:[%s2317_s8 + $0x470] sm:$0xff]  ;;  %v409_v38 = vld [vmem:[%s2317_s8 + $0x1f8] sm:$0xff] }
  0xde   : > { %979 = vmatpush.msra.mxu1 %v440_v39  ;;  %1021 = vmatpush.msra.mxu2 %v500_v40  ;;  %v552_v61 = vld [vmem:[%s2317_s8 + $0x670] sm:$0xff]  ;;  %v473_v39 = vld [vmem:[%s2317_s8 + $0x3f8] sm:$0xff] }
  0xdf   : > { %1062 = vmatpush.msra.mxu3 %v564_v41  ;;  %939 = vmatpush.msra.mxu0 %v372_v44  ;;  %v360_v6 = vld [vmem:[%s2317_s8 + $0x70] sm:$0xff]  ;;  %v533_v40 = vld [vmem:[%s2317_s8 + $0x5d8] sm:$0xff] }
  0xe0   : > { %980 = vmatpush.msra.mxu1 %v436_v45  ;;  %1022 = vmatpush.msra.mxu2 %v496_v48  ;;  %v424_v7 = vld [vmem:[%s2317_s8 + $0x270] sm:$0xff]  ;;  %v597_v41 = vld [vmem:[%s2317_s8 + $0x7d8] sm:$0xff] }
  0xe1   : > { %867 = vmatmul.f32.gmra.mxu2 %v2419_v14  ;;  %1063 = vmatpush.msra.mxu3 %v560_v49  ;;  %v484_v10 = vld [vmem:[%s2317_s8 + $0x450] sm:$0xff]  ;;  %v405_v44 = vld [vmem:[%s2317_s8 + $0x1d8] sm:$0xff] }
  0xe2   : > { %908 = vmatmul.f32.gmra.mxu3 %v2421_v15  ;;  %940 = vmatpush.msra.mxu0 %v368_v54  ;;  %v548_v11 = vld [vmem:[%s2317_s8 + $0x650] sm:$0xff]  ;;  %v469_v45 = vld [vmem:[%s2317_s8 + $0x3d8] sm:$0xff] }
  0xe3   : > { %981 = vmatpush.msra.mxu1 %v432_v55  ;;  %1023 = vmatpush.msra.mxu2 %v492_v56  ;;  %v356_v16 = vld [vmem:[%s2317_s8 + $0x50] sm:$0xff]  ;;  %v529_v48 = vld [vmem:[%s2317_s8 + $0x5b8] sm:$0xff] }
  0xe4   : > { %785 = vmatmul.f32.gmra.mxu0 %v2429_v20  ;;  %1064 = vmatpush.msra.mxu3 %v556_v57  ;;  %v420_v17 = vld [vmem:[%s2317_s8 + $0x250] sm:$0xff]  ;;  %v593_v49 = vld [vmem:[%s2317_s8 + $0x7b8] sm:$0xff] }
  0xe5   : > { %826 = vmatmul.f32.gmra.mxu1 %v2431_v21  ;;  %941 = vmatpush.msra.mxu0 %v364_v58  ;;  %v480_v18 = vld [vmem:[%s2317_s8 + $0x430] sm:$0xff]  ;;  %v401_v54 = vld [vmem:[%s2317_s8 + $0x1b8] sm:$0xff] }
  0xe6   : > { %982 = vmatpush.msra.mxu1 %v428_v59  ;;  %1024 = vmatpush.msra.mxu2 %v488_v60  ;;  %v544_v19 = vld [vmem:[%s2317_s8 + $0x630] sm:$0xff]  ;;  %v465_v55 = vld [vmem:[%s2317_s8 + $0x3b8] sm:$0xff] }
  0xe7   : > { %1065 = vmatpush.msra.mxu3 %v552_v61  ;;  %942 = vmatpush.msra.mxu0 %v360_v6  ;;  %v352_v24 = vld [vmem:[%s2317_s8 + $0x30] sm:$0xff]  ;;  %v525_v56 = vld [vmem:[%s2317_s8 + $0x598] sm:$0xff] }
  0xe8   : > { %983 = vmatpush.msra.mxu1 %v424_v7  ;;  %1025 = vmatpush.msra.mxu2 %v484_v10  ;;  %v416_v25 = vld [vmem:[%s2317_s8 + $0x230] sm:$0xff]  ;;  %v589_v57 = vld [vmem:[%s2317_s8 + $0x798] sm:$0xff] }
  0xe9   : > { %870 = vmatmul.f32.gmra.mxu2 %v2443_v30  ;;  %1066 = vmatpush.msra.mxu3 %v548_v11  ;;  %v476_v26 = vld [vmem:[%s2317_s8 + $0x410] sm:$0xff]  ;;  %v397_v58 = vld [vmem:[%s2317_s8 + $0x198] sm:$0xff] }
  0xea   : > { %911 = vmatmul.f32.gmra.mxu3 %v2445_v31  ;;  %943 = vmatpush.msra.mxu0 %v356_v16  ;;  %v540_v27 = vld [vmem:[%s2317_s8 + $0x610] sm:$0xff]  ;;  %v461_v59 = vld [vmem:[%s2317_s8 + $0x398] sm:$0xff] }
  0xeb   : > { %984 = vmatpush.msra.mxu1 %v420_v17  ;;  %1026 = vmatpush.msra.mxu2 %v480_v18  ;;  %v348_v32 = vld [vmem:[%s2317_s8 + $0x10] sm:$0xff]  ;;  %v521_v60 = vld [vmem:[%s2317_s8 + $0x578] sm:$0xff] }
  0xec   : > { %788 = vmatmul.f32.gmra.mxu0 %v2453_v36  ;;  %1067 = vmatpush.msra.mxu3 %v544_v19  ;;  %v412_v33 = vld [vmem:[%s2317_s8 + $0x210] sm:$0xff]  ;;  %v585_v61 = vld [vmem:[%s2317_s8 + $0x778] sm:$0xff] }
  0xed   : > { %829 = vmatmul.f32.gmra.mxu1 %v2455_v37  ;;  %944 = vmatpush.msra.mxu0 %v352_v24  ;;  %v393_v6 = vld [vmem:[%s2317_s8 + $0x178] sm:$0xff] }
  0xee   : > { %985 = vmatpush.msra.mxu1 %v416_v25  ;;  %1027 = vmatpush.msra.mxu2 %v476_v26  ;;  %v457_v7 = vld [vmem:[%s2317_s8 + $0x378] sm:$0xff] }
  0xef   : > { %1068 = vmatpush.msra.mxu3 %v540_v27  ;;  %945 = vmatpush.msra.mxu0 %v348_v32  ;;  %v517_v10 = vld [vmem:[%s2317_s8 + $0x558] sm:$0xff] }
  0xf0   : > { %986 = vmatpush.msra.mxu1 %v412_v33  ;;  %1176 = vmatpush.msrb.mxu2 %v537_v34  ;;  %v581_v11 = vld [vmem:[%s2317_s8 + $0x758] sm:$0xff] }
  0xf1   : > { %873 = vmatmul.f32.gmra.mxu2 %v2467_v46  ;;  %1217 = vmatpush.msrb.mxu3 %v601_v35  ;;  %v389_v16 = vld [vmem:[%s2317_s8 + $0x158] sm:$0xff] }
  0xf2   : > { %914 = vmatmul.f32.gmra.mxu3 %v2469_v47  ;;  %1094 = vmatpush.msrb.mxu0 %v409_v38  ;;  %v453_v17 = vld [vmem:[%s2317_s8 + $0x358] sm:$0xff] }
  0xf3   : > { %1135 = vmatpush.msrb.mxu1 %v473_v39  ;;  %1177 = vmatpush.msrb.mxu2 %v533_v40  ;;  %v513_v18 = vld [vmem:[%s2317_s8 + $0x538] sm:$0xff] }
  0xf4   : > { %791 = vmatmul.f32.gmra.mxu0 %v2477_v52  ;;  %1218 = vmatpush.msrb.mxu3 %v597_v41  ;;  %v577_v19 = vld [vmem:[%s2317_s8 + $0x738] sm:$0xff] }
  0xf5   : > { %832 = vmatmul.f32.gmra.mxu1 %v2479_v53  ;;  %1095 = vmatpush.msrb.mxu0 %v405_v44  ;;  %v385_v24 = vld [vmem:[%s2317_s8 + $0x138] sm:$0xff] }
  0xf6   : > { %1136 = vmatpush.msrb.mxu1 %v469_v45  ;;  %1178 = vmatpush.msrb.mxu2 %v529_v48  ;;  %v449_v25 = vld [vmem:[%s2317_s8 + $0x338] sm:$0xff] }
  0xf7   : > { %1219 = vmatpush.msrb.mxu3 %v593_v49  ;;  %1096 = vmatpush.msrb.mxu0 %v401_v54  ;;  %v509_v26 = vld [vmem:[%s2317_s8 + $0x518] sm:$0xff] }
  0xf8   : > { %1137 = vmatpush.msrb.mxu1 %v465_v55  ;;  %1179 = vmatpush.msrb.mxu2 %v525_v56  ;;  %v573_v33 = vld [vmem:[%s2317_s8 + $0x718] sm:$0xff] }
  0xf9   : > { %876 = vmatmul.f32.gmra.mxu2 %v2491_v0  ;;  %1220 = vmatpush.msrb.mxu3 %v589_v57  ;;  %v381_v34 = vld [vmem:[%s2317_s8 + $0x118] sm:$0xff] }
  0xfa   : > { %917 = vmatmul.f32.gmra.mxu3 %v2493_v1  ;;  %1097 = vmatpush.msrb.mxu0 %v397_v58  ;;  %v445_v35 = vld [vmem:[%s2317_s8 + $0x318] sm:$0xff] }
  0xfb   : > { %1138 = vmatpush.msrb.mxu1 %v461_v59  ;;  %1180 = vmatpush.msrb.mxu2 %v521_v60  ;;  %v505_v39 = vld [vmem:[%s2317_s8 + $0x4f8] sm:$0xff] }
  0xfc   : > { %794 = vmatmul.f32.gmra.mxu0 %v2501_v8  ;;  %1221 = vmatpush.msrb.mxu3 %v585_v61  ;;  %v569_v40 = vld [vmem:[%s2317_s8 + $0x6f8] sm:$0xff] }
  0xfd   : > { %835 = vmatmul.f32.gmra.mxu1 %v2503_v9  ;;  %1098 = vmatpush.msrb.mxu0 %v393_v6  ;;  %v377_v44 = vld [vmem:[%s2317_s8 + $0xf8] sm:$0xff] }
  0xfe   : > { %1139 = vmatpush.msrb.mxu1 %v457_v7  ;;  %1181 = vmatpush.msrb.mxu2 %v517_v10  ;;  %v441_v45 = vld [vmem:[%s2317_s8 + $0x2f8] sm:$0xff] }
  0xff   : > { %1222 = vmatpush.msrb.mxu3 %v581_v11  ;;  %1099 = vmatpush.msrb.mxu0 %v389_v16  ;;  %v501_v48 = vld [vmem:[%s2317_s8 + $0x4d8] sm:$0xff] }
 0x100   : > { %1140 = vmatpush.msrb.mxu1 %v453_v17  ;;  %1182 = vmatpush.msrb.mxu2 %v513_v18  ;;  %v373_v55 = vld [vmem:[%s2317_s8 + $0xd8] sm:$0xff] }
 0x101   : > { %879 = vmatmul.f32.gmra.mxu2 %v2515_v22  ;;  %1223 = vmatpush.msrb.mxu3 %v577_v19  ;;  %v437_v56 = vld [vmem:[%s2317_s8 + $0x2d8] sm:$0xff] }
 0x102   : > { %920 = vmatmul.f32.gmra.mxu3 %v2517_v23  ;;  %1100 = vmatpush.msrb.mxu0 %v385_v24  ;;  %v497_v58 = vld [vmem:[%s2317_s8 + $0x4b8] sm:$0xff] }
 0x103   : > { %1141 = vmatpush.msrb.mxu1 %v449_v25  ;;  %1183 = vmatpush.msrb.mxu2 %v509_v26  ;;  %v561_v59 = vld [vmem:[%s2317_s8 + $0x6b8] sm:$0xff] }
 0x104   : > { %797 = vmatmul.f32.gmra.mxu0 %v2525_v28  ;;  %1224 = vmatpush.msrb.mxu3 %v573_v33  ;;  %v369_v61 = vld [vmem:[%s2317_s8 + $0xb8] sm:$0xff] }
 0x105   : > { %838 = vmatmul.f32.gmra.mxu1 %v2527_v29  ;;  %1101 = vmatpush.msrb.mxu0 %v381_v34  ;;  %v433_v6 = vld [vmem:[%s2317_s8 + $0x2b8] sm:$0xff] }
 0x106   : > { %1142 = vmatpush.msrb.mxu1 %v445_v35  ;;  %1184 = vmatpush.msrb.mxu2 %v505_v39  ;;  %v493_v7 = vld [vmem:[%s2317_s8 + $0x498] sm:$0xff] }
 0x107   : > { %1225 = vmatpush.msrb.mxu3 %v569_v40  ;;  %1102 = vmatpush.msrb.mxu0 %v377_v44  ;;  %v365_v16 = vld [vmem:[%s2317_s8 + $0x98] sm:$0xff] }
 0x108   : > { %1143 = vmatpush.msrb.mxu1 %v441_v45  ;;  %1185 = vmatpush.msrb.mxu2 %v501_v48  ;;  %v429_v17 = vld [vmem:[%s2317_s8 + $0x298] sm:$0xff] }
 0x109   : > { %882 = vmatmul.f32.gmra.mxu2 %v2539_v42  ;;  %1103 = vmatpush.msrb.mxu0 %v373_v55  ;;  %v489_v19 = vld [vmem:[%s2317_s8 + $0x478] sm:$0xff] }
 0x10a   : > { %923 = vmatmul.f32.gmra.mxu3 %v2541_v43  ;;  %1144 = vmatpush.msrb.mxu1 %v437_v56  ;;  %v553_v24 = vld [vmem:[%s2317_s8 + $0x678] sm:$0xff] }
 0x10b   : > { %1186 = vmatpush.msrb.mxu2 %v497_v58  ;;  %1104 = vmatpush.msrb.mxu0 %v369_v61  ;;  %v361_v26 = vld [vmem:[%s2317_s8 + $0x78] sm:$0xff] }
 0x10c   : > { %800 = vmatmul.f32.gmra.mxu0 %v2549_v50  ;;  %1145 = vmatpush.msrb.mxu1 %v433_v6  ;;  %v357_v35 = vld [vmem:[%s2317_s8 + $0x58] sm:$0xff] }
 0x10d   : > { %841 = vmatmul.f32.gmra.mxu1 %v2551_v51  ;;  %1187 = vmatpush.msrb.mxu2 %v493_v7  ;;  %v481_v40 = vld [vmem:[%s2317_s8 + $0x438] sm:$0xff] }
 0x10e   : > { %1105 = vmatpush.msrb.mxu0 %v365_v16  ;;  %1146 = vmatpush.msrb.mxu1 %v429_v17  ;;  %v417_v44 = vld [vmem:[%s2317_s8 + $0x238] sm:$0xff] }
 0x10f   : > { %1188 = vmatpush.msrb.mxu2 %v489_v19  ;;  %v477_v45 = vld [vmem:[%s2317_s8 + $0x418] sm:$0xff] }
 0x110   : > { %1106 = vmatpush.msrb.mxu0 %v361_v26  ;;  %v541_v55 = vld [vmem:[%s2317_s8 + $0x618] sm:$0xff] }
 0x111   : > { %885 = vmatmul.f32.gmra.mxu2 %v2563_v2  ;;  %v349_v58 = vld [vmem:[%s2317_s8 + $0x18] sm:$0xff] }
 0x112   : > { %926 = vmatmul.f32.gmra.mxu3 %v2565_v3  ;;  %1107 = vmatpush.msrb.mxu0 %v357_v35  ;;  %v1916_v35 = vld [vmem:[#allocation2 + $0x10] sm:$0xff] }
 0x114   : > { %803 = vmatmul.f32.gmra.mxu0 %v2573_v12 }
 0x115   : > { %844 = vmatmul.f32.gmra.mxu1 %v2575_v13 }
 0x119   : > { %1028 = vmatmul.f32.vlgmr.msra.gmra.mxu2 %v2395_v62  ;;  %v619_v27 = vpop.f32.mrf.mxu0 }
 0x11a   : > { %v660_v32 = vpop.f32.mrf.mxu1  ;;  %1069 = vmatmul.f32.vlgmr.msra.gmra.mxu3 %v2397_v63 }
 0x11b   : > { %v661_v38 = vadd.f32 %v660_v32, %v619_v27  ;;  %v425_v27 = vld [vmem:[%s2317_s8 + $0x278] sm:$0xff] }
 0x11c   : > { %v701_v41 = vpop.f32.mrf.mxu2  ;;  %946 = vmatmul.f32.vlgmr.msra.gmra.mxu0 %v2405_v4  ;;  %v485_v32 = vld [vmem:[%s2317_s8 + $0x458] sm:$0xff]  ;;  %1147 = vmatpush.msrb.mxu1 %v425_v27 }
 0x11d   : > { %987 = vmatmul.f32.vlgmr.msra.gmra.mxu1 %v2407_v5  ;;  %v742_v62 = vpop.f32.mrf.mxu3  ;;  %v702_v63 = vadd.f32 %v701_v41, %v661_v38  ;;  %v565_v5 = vld [vmem:[%s2317_s8 + $0x6d8] sm:$0xff]  ;;  %1189 = vmatpush.msrb.mxu2 %v485_v32 }
 0x11e   : > { %1226 = vmatpush.msrb.mxu3 %v565_v5  ;;  %v421_v38 = vld [vmem:[%s2317_s8 + $0x258] sm:$0xff] }
 0x11f   : > { %v2694_v49 = vadd.f32 %v742_v62, %v702_v63  ;;  %v545_v41 = vld [vmem:[%s2317_s8 + $0x638] sm:$0xff]  ;;  %1148 = vmatpush.msrb.mxu1 %v421_v38  ;;  %1190 = vmatpush.msrb.mxu2 %v481_v40 }
 0x120   : > { %1227 = vmatpush.msrb.mxu3 %v561_v59  ;;  %v353_v63 = vld [vmem:[%s2317_s8 + $0x38] sm:$0xff] }
 0x121   : > { %1031 = vmatmul.f32.gmra.mxu2 %v2419_v14  ;;  %v622_v4 = vpop.f32.mrf.mxu0  ;;  %1108 = vmatpush.msrb.mxu0 %v353_v63  ;;  %v413_v59 = vld [vmem:[%s2317_s8 + $0x218] sm:$0xff] }
 0x122   : > { %v663_v54 = vpop.f32.mrf.mxu1  ;;  %1072 = vmatmul.f32.gmra.mxu3 %v2421_v15  ;;  %1149 = vmatpush.msrb.mxu1 %v417_v44  ;;  %v1917_v40 = vld [vmem:[#allocation2 + $0x18] sm:$0xff] }
 0x123   : > { %v664_v57 = vadd.f32 %v663_v54, %v622_v4  ;;  %1191 = vmatpush.msrb.mxu2 %v477_v45  ;;  %1109 = vmatpush.msrb.mxu0 %v349_v58  ;;  %v1922_v58 = vld [vmem:[#allocation2 + $0x20] sm:$0xff] }
 0x124   : > { %v704_v60 = vpop.f32.mrf.mxu2  ;;  %949 = vmatmul.f32.gmra.mxu0 %v2429_v20  ;;  %1150 = vmatpush.msrb.mxu1 %v413_v59  ;;  %v1923_v59 = vld [vmem:[#allocation2 + $0x28] sm:$0xff] }
 0x125   : > { %990 = vmatmul.f32.gmra.mxu1 %v2431_v21  ;;  %v745_v14 = vpop.f32.mrf.mxu3  ;;  %v705_v15 = vadd.f32 %v704_v60, %v664_v57  ;;  %v557_v21 = vld [vmem:[%s2317_s8 + $0x698] sm:$0xff] }
 0x126   : > { %1228 = vmatpush.msrb.mxu3 %v557_v21 }
 0x127   : > { %v2708_v10 = vadd.f32 %v745_v14, %v705_v15 }
 0x128   : > { %1229 = vmatpush.msrb.mxu3 %v553_v24 }
 0x129   : > { %1034 = vmatmul.f32.gmra.mxu2 %v2443_v30  ;;  %v625_v20 = vpop.f32.mrf.mxu0 }
 0x12a   : > { %v666_v11 = vpop.f32.mrf.mxu1  ;;  %1075 = vmatmul.f32.gmra.mxu3 %v2445_v31 }
 0x12b   : > { %v667_v18 = vadd.f32 %v666_v11, %v625_v20 }
 0x12c   : > { %v707_v25 = vpop.f32.mrf.mxu2  ;;  %952 = vmatmul.f32.gmra.mxu0 %v2453_v36 }
 0x12d   : > { %993 = vmatmul.f32.gmra.mxu1 %v2455_v37  ;;  %v748_v30 = vpop.f32.mrf.mxu3  ;;  %v708_v31 = vadd.f32 %v707_v25, %v667_v18  ;;  %v549_v37 = vld [vmem:[%s2317_s8 + $0x658] sm:$0xff] }
 0x12e   : > { %1230 = vmatpush.msrb.mxu3 %v549_v37 }
 0x12f   : > { %v2722_v33 = vadd.f32 %v748_v30, %v708_v31 }
 0x130   : > { %1231 = vmatpush.msrb.mxu3 %v545_v41 }
 0x131   : > { %1037 = vmatmul.f32.gmra.mxu2 %v2467_v46  ;;  %v628_v36 = vpop.f32.mrf.mxu0 }
 0x132   : > { %v669_v34 = vpop.f32.mrf.mxu1  ;;  %1078 = vmatmul.f32.gmra.mxu3 %v2469_v47 }
 0x133   : > { %v670_v39 = vadd.f32 %v669_v34, %v628_v36  ;;  %1232 = vmatpush.msrb.mxu3 %v541_v55  ;;  %v1921_v55 = vld [vmem:[#allocation2 + $0x38] sm:$0xff] }
 0x134   : > { %v710_v62 = vpop.f32.mrf.mxu2  ;;  %955 = vmatmul.f32.gmra.mxu0 %v2477_v52 }
 0x135   : > { %996 = vmatmul.f32.gmra.mxu1 %v2479_v53  ;;  %v751_v46 = vpop.f32.mrf.mxu3  ;;  %v711_v47 = vadd.f32 %v710_v62, %v670_v39 }
 0x137   : > { %v2736_v48 = vadd.f32 %v751_v46, %v711_v47  ;;  %v1918_v46 = vld [vmem:[#allocation2] sm:$0xff]  ;;  %v1919_v47 = vld [vmem:[#allocation2 + $0x8] sm:$0xff] }
 0x139   : > { %1040 = vmatmul.f32.gmra.mxu2 %v2491_v0  ;;  %v631_v4 = vpop.f32.mrf.mxu0 }
 0x13a   : > { %v672_v54 = vpop.f32.mrf.mxu1  ;;  %1081 = vmatmul.f32.gmra.mxu3 %v2493_v1 }
 0x13b   : > { %v673_v5 = vadd.f32 %v672_v54, %v631_v4  ;;  %v1920_v4 = vld [vmem:[#allocation2 + $0x30] sm:$0xff] }
 0x13c   : > { %v713_v56 = vpop.f32.mrf.mxu2  ;;  %958 = vmatmul.f32.gmra.mxu0 %v2501_v8 }
 0x13d   : > { %999 = vmatmul.f32.gmra.mxu1 %v2503_v9  ;;  %v754_v57 = vpop.f32.mrf.mxu3  ;;  %v714_v60 = vadd.f32 %v713_v56, %v673_v5 }
 0x13f   : > { %v2745_v14 = vadd.f32 %v754_v57, %v714_v60 }
 0x141   : > { %1043 = vmatmul.f32.gmra.mxu2 %v2515_v22  ;;  %v634_v15 = vpop.f32.mrf.mxu0 }
 0x142   : > { %v675_v61 = vpop.f32.mrf.mxu1  ;;  %1084 = vmatmul.f32.gmra.mxu3 %v2517_v23 }
 0x143   : > { %v676_v6 = vadd.f32 %v675_v61, %v634_v15 }
 0x144   : > { %v716_v7 = vpop.f32.mrf.mxu2  ;;  %961 = vmatmul.f32.gmra.mxu0 %v2525_v28 }
 0x145   : > { %1002 = vmatmul.f32.gmra.mxu1 %v2527_v29  ;;  %v757_v20 = vpop.f32.mrf.mxu3  ;;  %v717_v11 = vadd.f32 %v716_v7, %v676_v6  ;;  %v1924_v6 = vld [vmem:[#allocation2 + $0x50] sm:$0xff] }
 0x147   : > { %v2751_v21 = vadd.f32 %v757_v20, %v717_v11  ;;  %v1925_v11 = vld [vmem:[#allocation2 + $0x58] sm:$0xff] }
 0x149   : > { %1046 = vmatmul.f32.gmra.mxu2 %v2539_v42  ;;  %v637_v16 = vpop.f32.mrf.mxu0 }
 0x14a   : > { %v678_v17 = vpop.f32.mrf.mxu1  ;;  %1087 = vmatmul.f32.gmra.mxu3 %v2541_v43 }
 0x14b   : > { %v679_v18 = vadd.f32 %v678_v17, %v637_v16  ;;  %v1926_v17 = vld [vmem:[#allocation2 + $0x40] sm:$0xff] }
 0x14c   : > { %v719_v19 = vpop.f32.mrf.mxu2  ;;  %964 = vmatmul.f32.gmra.mxu0 %v2549_v50 }
 0x14d   : > { %1005 = vmatmul.f32.gmra.mxu1 %v2551_v51  ;;  %v760_v24 = vpop.f32.mrf.mxu3  ;;  %v720_v25 = vadd.f32 %v719_v19, %v679_v18 }
 0x14f   : > { %v2757_v30 = vadd.f32 %v760_v24, %v720_v25  ;;  %v1927_v24 = vld [vmem:[#allocation2 + $0x48] sm:$0xff] }
 0x151   : > { %1049 = vmatmul.f32.gmra.mxu2 %v2563_v2  ;;  %v640_v31 = vpop.f32.mrf.mxu0 }
 0x152   : > { %v681_v26 = vpop.f32.mrf.mxu1  ;;  %1090 = vmatmul.f32.gmra.mxu3 %v2565_v3 }
 0x153   : > { %v682_v27 = vadd.f32 %v681_v26, %v640_v31  ;;  %v1928_v26 = vld [vmem:[#allocation2 + $0x70] sm:$0xff] }
 0x154   : > { %v722_v32 = vpop.f32.mrf.mxu2  ;;  %967 = vmatmul.f32.gmra.mxu0 %v2573_v12 }
 0x155   : > { %1008 = vmatmul.f32.gmra.mxu1 %v2575_v13  ;;  %v763_v36 = vpop.f32.mrf.mxu3  ;;  %v723_v34 = vadd.f32 %v722_v32, %v682_v27 }
 0x157   : > { %v2763_v37 = vadd.f32 %v763_v36, %v723_v34  ;;  %v1929_v34 = vld [vmem:[#allocation2 + $0x78] sm:$0xff] }
 0x159   : > { %1192 = vmatmul.f32.vlgmr.msrb.gmra.mxu2 %v1916_v35  ;;  %v783_v38 = vpop.f32.mrf.mxu0 }
 0x15a   : > { %v824_v39 = vpop.f32.mrf.mxu1  ;;  %1233 = vmatmul.f32.vlgmr.msrb.gmra.mxu3 %v1917_v40 }
 0x15b   : > { %v825_v41 = vadd.f32 %v824_v39, %v783_v38 }
 0x15c   : > { %v865_v62 = vpop.f32.mrf.mxu2  ;;  %1110 = vmatmul.f32.vlgmr.msrb.gmra.mxu0 %v1918_v46 }
 0x15d   : > { %1151 = vmatmul.f32.vlgmr.msrb.gmra.mxu1 %v1919_v47  ;;  %v906_v63 = vpop.f32.mrf.mxu3  ;;  %v866_v44 = vadd.f32 %v865_v62, %v825_v41 }
 0x15f   : > { %v2765_v45 = vadd.f32 %v906_v63, %v866_v44 }
 0x161   : > { %1195 = vmatmul.f32.gmra.mxu2 %v1920_v4  ;;  %v786_v54 = vpop.f32.mrf.mxu0 }
 0x162   : > { %v827_v5 = vpop.f32.mrf.mxu1  ;;  %1236 = vmatmul.f32.gmra.mxu3 %v1921_v55 }
 0x163   : > { %v828_v56 = vadd.f32 %v827_v5, %v786_v54 }
 0x164   : > { %v868_v57 = vpop.f32.mrf.mxu2  ;;  %1113 = vmatmul.f32.gmra.mxu0 %v1922_v58 }
 0x165   : > { %1154 = vmatmul.f32.gmra.mxu1 %v1923_v59  ;;  %v909_v60 = vpop.f32.mrf.mxu3  ;;  %v869_v15 = vadd.f32 %v868_v57, %v828_v56 }
 0x167   : > { %v2767_v61 = vadd.f32 %v909_v60, %v869_v15 }
 0x169   : > { %3193 = vst [vmem:[#allocation16_spill] sm:$0xff] %v2767_v61  ;;  %1198 = vmatmul.f32.gmra.mxu2 %v1924_v6  ;;  %v789_v7 = vpop.f32.mrf.mxu0 }
 0x16a   : > { %v830_v20 = vpop.f32.mrf.mxu1  ;;  %1239 = vmatmul.f32.gmra.mxu3 %v1925_v11 }
 0x16b   : > { %v831_v19 = vadd.f32 %v830_v20, %v789_v7 }
 0x16c   : > { %v871_v16 = vpop.f32.mrf.mxu2  ;;  %1116 = vmatmul.f32.gmra.mxu0 %v1926_v17 }
 0x16d   : > { %v912_v18 = vpop.f32.mrf.mxu3  ;;  %1157 = vmatmul.f32.gmra.mxu1 %v1927_v24  ;;  %v872_v25 = vadd.f32 %v871_v16, %v831_v19 }
 0x16f   : > { %v2769_v31 = vadd.f32 %v912_v18, %v872_v25 }
 0x171   : > { %3194 = vst [vmem:[#allocation17_spill] sm:$0xff] %v2769_v31  ;;  %1201 = vmatmul.f32.gmra.mxu2 %v1928_v26  ;;  %v792_v27 = vpop.f32.mrf.mxu0 }
 0x172   : > { %v833_v32 = vpop.f32.mrf.mxu1  ;;  %1242 = vmatmul.f32.gmra.mxu3 %v1929_v34 }
 0x173   : > { %v834_v36 = vadd.f32 %v833_v32, %v792_v27 }
 0x174   : > { %v874_v35 = vpop.f32.mrf.mxu2  ;;  %1119 = vmatmul.f32.gmra.mxu0 %v2477_v52 }
 0x175   : > { %v915_v38 = vpop.f32.mrf.mxu3  ;;  %v875_v39 = vadd.f32 %v874_v35, %v834_v36  ;;  %1160 = vmatmul.f32.gmra.mxu1 %v2479_v53 }
 0x177   : > { %v2773_v40 = vadd.f32 %v915_v38, %v875_v39 }
 0x179   : > { %3195 = vst [vmem:[#allocation18_spill] sm:$0xff] %v2773_v40  ;;  %1204 = vmatmul.f32.gmra.mxu2 %v2491_v0  ;;  %v795_v41 = vpop.f32.mrf.mxu0 }
 0x17a   : > { %v836_v62 = vpop.f32.mrf.mxu1  ;;  %1245 = vmatmul.f32.gmra.mxu3 %v2493_v1 }
 0x17b   : > { %v837_v46 = vadd.f32 %v836_v62, %v795_v41 }
 0x17c   : > { %v877_v47 = vpop.f32.mrf.mxu2  ;;  %1122 = vmatmul.f32.gmra.mxu0 %v2501_v8 }
 0x17d   : > { %v918_v63 = vpop.f32.mrf.mxu3  ;;  %v878_v44 = vadd.f32 %v877_v47, %v837_v46  ;;  %1163 = vmatmul.f32.gmra.mxu1 %v2503_v9 }
 0x17f   : > { %v2779_v52 = vadd.f32 %v918_v63, %v878_v44 }
 0x181   : > { %1207 = vmatmul.f32.gmra.mxu2 %v2515_v22  ;;  %v798_v53 = vpop.f32.mrf.mxu0 }
 0x182   : > { %v839_v4 = vpop.f32.mrf.mxu1  ;;  %1248 = vmatmul.f32.gmra.mxu3 %v2517_v23 }
 0x183   : > { %v840_v54 = vadd.f32 %v839_v4, %v798_v53 }
 0x184   : > { %v880_v0 = vpop.f32.mrf.mxu2  ;;  %1125 = vmatmul.f32.gmra.mxu0 %v2525_v28 }
 0x185   : > { %v921_v1 = vpop.f32.mrf.mxu3  ;;  %v881_v5 = vadd.f32 %v880_v0, %v840_v54  ;;  %1166 = vmatmul.f32.gmra.mxu1 %v2527_v29 }
 0x187   : > { %v2785_v8 = vadd.f32 %v921_v1, %v881_v5 }
 0x189   : > { %1210 = vmatmul.f32.gmra.mxu2 %v2539_v42  ;;  %v801_v9 = vpop.f32.mrf.mxu0 }
 0x18a   : > { %v842_v55 = vpop.f32.mrf.mxu1  ;;  %1251 = vmatmul.f32.gmra.mxu3 %v2541_v43 }
 0x18b   : > { %v843_v56 = vadd.f32 %v842_v55, %v801_v9 }
 0x18c   : > { %v883_v22 = vpop.f32.mrf.mxu2  ;;  %1128 = vmatmul.f32.gmra.mxu0 %v2549_v50 }
 0x18d   : > { %v924_v23 = vpop.f32.mrf.mxu3  ;;  %v884_v57 = vadd.f32 %v883_v22, %v843_v56  ;;  %1169 = vmatmul.f32.gmra.mxu1 %v2551_v51 }
 0x18f   : > { %v2791_v28 = vadd.f32 %v924_v23, %v884_v57 }
 0x191   : > { %1213 = vmatmul.f32.gmra.mxu2 %v2563_v2  ;;  %v804_v29 = vpop.f32.mrf.mxu0 }
 0x192   : > { %v845_v58 = vpop.f32.mrf.mxu1  ;;  %1254 = vmatmul.f32.gmra.mxu3 %v2565_v3 }
 0x193   : > { %v846_v59 = vadd.f32 %v845_v58, %v804_v29 }
 0x194   : > { %v886_v42 = vpop.f32.mrf.mxu2  ;;  %1131 = vmatmul.f32.gmra.mxu0 %v2573_v12 }
 0x195   : > { %v927_v43 = vpop.f32.mrf.mxu3  ;;  %v887_v60 = vadd.f32 %v886_v42, %v846_v59  ;;  %1172 = vmatmul.f32.gmra.mxu1 %v2575_v13  ;;  %v1271_v59 = vadd.f32 %v2767_v61, %v2765_v45 }
 0x197   : > { %v2797_v50 = vadd.f32 %v927_v43, %v887_v60  ;;  %v1272_v43 = vadd.f32 %v1271_v59, %v2769_v31 }
 0x199   : > { %v947_v15 = vpop.f32.mrf.mxu0 }
 0x19a   : > { %v988_v51 = vpop.f32.mrf.mxu1 }
 0x19b   : > { %v989_v6 = vadd.f32 %v988_v51, %v947_v15 }
 0x19c   : > { %v1029_v7 = vpop.f32.mrf.mxu2 }
 0x19d   : > { %v1070_v20 = vpop.f32.mrf.mxu3  ;;  %v1030_v2 = vadd.f32 %v1029_v7, %v989_v6  ;;  %v1273_v7 = vadd.f32 %v1272_v43, %v2773_v40 }
 0x19f   : > { %v2799_v11 = vadd.f32 %v1070_v20, %v1030_v2 }
 0x1a1   : > { %v950_v16 = vpop.f32.mrf.mxu0 }
 0x1a2   : > { %v991_v17 = vpop.f32.mrf.mxu1 }
 0x1a3   : > { %v992_v3 = vadd.f32 %v991_v17, %v950_v16  ;;  %v1258_v16 = vadd.f32 %v2708_v10, %v2694_v49  ;;  %v1274_v17 = vadd.f32 %v1273_v7, %v2779_v52 }
 0x1a4   : > { %v1032_v18 = vpop.f32.mrf.mxu2 }
 0x1a5   : > { %v1073_v19 = vpop.f32.mrf.mxu3  ;;  %v1033_v12 = vadd.f32 %v1032_v18, %v992_v3 }
 0x1a7   : > { %v2801_v24 = vadd.f32 %v1073_v19, %v1033_v12  ;;  %v1259_v12 = vadd.f32 %v1258_v16, %v2722_v33 }
 0x1a9   : > { %3196 = vst [vmem:[#allocation19_spill] sm:$0xff] %v2801_v24  ;;  %v953_v25 = vpop.f32.mrf.mxu0  ;;  %v1284_v51 = vadd.f32 %v2801_v24, %v2799_v11 }
 0x1aa   : > { %v994_v13 = vpop.f32.mrf.mxu1 }
 0x1ab   : > { %v995_v32 = vadd.f32 %v994_v13, %v953_v25  ;;  %v1275_v25 = vadd.f32 %v1274_v17, %v2785_v8 }
 0x1ac   : > { %v1035_v26 = vpop.f32.mrf.mxu2 }
 0x1ad   : > { %v1076_v27 = vpop.f32.mrf.mxu3  ;;  %v1036_v36 = vadd.f32 %v1035_v26, %v995_v32  ;;  %v1276_v32 = vadd.f32 %v1275_v25, %v2791_v28 }
 0x1af   : > { %v2803_v34 = vadd.f32 %v1076_v27, %v1036_v36  ;;  %v1260_v27 = vadd.f32 %v1259_v12, %v2736_v48 }
 0x1b1   : > { %3197 = vst [vmem:[#allocation20_spill] sm:$0xff] %v2803_v34  ;;  %v956_v35 = vpop.f32.mrf.mxu0  ;;  %v1285_v20 = vadd.f32 %v1284_v51, %v2803_v34 }
 0x1b2   : > { %v997_v38 = vpop.f32.mrf.mxu1 }
 0x1b3   : > { %v998_v39 = vadd.f32 %v997_v38, %v956_v35 }
 0x1b4   : > { %v1038_v41 = vpop.f32.mrf.mxu2 }
 0x1b5   : > { %v1079_v62 = vpop.f32.mrf.mxu3  ;;  %v1039_v46 = vadd.f32 %v1038_v41, %v998_v39  ;;  %v1261_v41 = vadd.f32 %v1260_v27, %v2745_v14 }
 0x1b7   : > { %v2805_v47 = vadd.f32 %v1079_v62, %v1039_v46  ;;  %v1277_v62 = vadd.f32 %v1276_v32, %v2797_v50 }
 0x1b9   : > { %3198 = vst [vmem:[#allocation21_spill] sm:$0xff] %v2805_v47  ;;  %v959_v63 = vpop.f32.mrf.mxu0  ;;  %v1286_v3 = vadd.f32 %v1285_v20, %v2805_v47 }
 0x1ba   : > { %v1000_v44 = vpop.f32.mrf.mxu1 }
 0x1bb   : > { %v1001_v53 = vadd.f32 %v1000_v44, %v959_v63  ;;  %v1262_v44 = vadd.f32 %v1261_v41, %v2751_v21 }
 0x1bc   : > { %v1041_v4 = vpop.f32.mrf.mxu2 }
 0x1bd   : > { %v1082_v54 = vpop.f32.mrf.mxu3  ;;  %v1042_v0 = vadd.f32 %v1041_v4, %v1001_v53  ;;  %v2130_v53 = vmov 64.0  }
 0x1be   : > { %1906 = vrcp.f32 %v2130_v53 }
 0x1bf   : > { %v2807_v1 = vadd.f32 %v1082_v54, %v1042_v0 }
 0x1c1   : > { %v962_v5 = vpop.f32.mrf.mxu0  ;;  %v1287_v26 = vadd.f32 %v1286_v3, %v2807_v1 }
 0x1c2   : > { %v1003_v9 = vpop.f32.mrf.mxu1 }
 0x1c3   : > { %v1004_v55 = vadd.f32 %v1003_v9, %v962_v5  ;;  %v1263_v5 = vadd.f32 %v1262_v44, %v2757_v30  ;;  %v1278_v9 = vrot.slane %v1277_v62, 4 }
 0x1c4   : > { %v1044_v56 = vpop.f32.mrf.mxu2 }
 0x1c5   : > { %v1085_v22 = vpop.f32.mrf.mxu3  ;;  %v1045_v23 = vadd.f32 %v1044_v56, %v1004_v55  ;;  %v1264_v55 = vadd.f32 %v1263_v5, %v2763_v37 }
 0x1c7   : > { %v2809_v57 = vadd.f32 %v1085_v22, %v1045_v23  ;;  %v1265_v59 = vrot.slane %v1264_v55, 4 }
 0x1c9   : > { %v965_v29 = vpop.f32.mrf.mxu0  ;;  %v1288_v38 = vadd.f32 %v1287_v26, %v2809_v57 }
 0x1ca   : > { %v1006_v58 = vpop.f32.mrf.mxu1 }
 0x1cb   : > { %v1007_v42 = vadd.f32 %v1006_v58, %v965_v29  ;;  %v1907_v29 = vpop.eup %1906  ;;  %v1279_v58 = vadd.f32 %v1278_v9, %v1277_v62 }
 0x1cc   : > { %v1047_v60 = vpop.f32.mrf.mxu2  ;;  %vm1315_vm0 = vweird.f32 %v1907_v29 }
 0x1cd   : > { %v1088_v15 = vpop.f32.mrf.mxu3  ;;  %v1048_v6 = vadd.f32 %v1047_v60, %v1007_v42  ;;  %v1311_v42 = vmul.f32 64.0, %v1907_v29  ;;  %v1280_v51 = vrot.slane %v1279_v58, 2 }
 0x1cf   : > { %v2818_v2 = vadd.f32 %v1088_v15, %v1048_v6  ;;  %v1266_v6 = vadd.f32 %v1265_v59, %v1264_v55  ;;  %v1312_v16 = vsub.f32 1.0, %v1311_v42  ;;  %v1281_v3 = vadd.f32 %v1280_v51, %v1279_v58 }
 0x1d1   : > { %v968_v18 = vpop.f32.mrf.mxu0  ;;  %v1289_v46 = vadd.f32 %v1288_v38, %v2818_v2 }
 0x1d2   : > { %v1009_v19 = vpop.f32.mrf.mxu1 }
 0x1d3   : > { %v1010_v13 = vadd.f32 %v1009_v19, %v968_v18  ;;  %v1267_v18 = vrot.slane %v1266_v6, 2  ;;  %v1313_v19 = vmul.f32 %v1907_v29, %v1312_v16 }
 0x1d4   : > { %v1050_v36 = vpop.f32.mrf.mxu2 }
 0x1d5   : > { %v1091_v35 = vpop.f32.mrf.mxu3  ;;  %v1051_v39 = vadd.f32 %v1050_v36, %v1010_v13  ;;  %v1282_v13 = vrot.slane %v1281_v3, 1  ;;  %v1268_v27 = vadd.f32 %v1267_v18, %v1266_v6  ;;  %v1314_v36 = vadd.f32 %v1907_v29, %v1313_v19 }
 0x1d7   : > { %v2833_v63 = vadd.f32 %v1091_v35, %v1051_v39  ;;  %v1283_v39 = vadd.f32 %v1282_v13, %v1281_v3  ;;  %v1269_v41 = vrot.slane %v1268_v27, 1  ;;  %v2853_v62 = vsel %vm1315_vm0, %v1907_v29, %v1314_v36 }
 0x1d9   : > { %v1290_v4 = vadd.f32 %v1289_v46, %v2833_v63  ;;  %v2837_v54 = vpop.f32.mrf.mxu0  ;;  %v2856_v53 = vmul.f32 %v2853_v62, %v1283_v39  ;;  %v1270_v5 = vadd.f32 %v1269_v41, %v1268_v27 }
 0x1da   : > { %v2839_v0 = vpop.f32.mrf.mxu1 }
 0x1db   : > { %v1291_v23 = vrot.slane %v1290_v4, 4  ;;  %v1322_v58 = vsub.f32 %v2765_v45, %v2856_v53  ;;  %v1326_v29 = vsub.f32 %v2767_v61, %v2856_v53  ;;  %v2868_v59 = vmul.f32 %v2853_v62, %v1270_v5 }
 0x1dc   : > { %v2843_v56 = vpop.f32.mrf.mxu2  ;;  %v1330_v19 = vsub.f32 %v2769_v31, %v2856_v53  ;;  %v1334_v5 = vsub.f32 %v2773_v40, %v2856_v53 }
 0x1dd   : > { %v2845_v22 = vpop.f32.mrf.mxu3  ;;  %v1292_v43 = vadd.f32 %v1291_v23, %v1290_v4  ;;  %v1354_v6 = vmul.f32 %v1322_v58, %v1322_v58  ;;  %v1358_v16 = vmul.f32 %v1326_v29, %v1326_v29  ;;  %v1321_v3 = vsub.f32 %v2694_v49, %v2868_v59 }
 0x1de   : > { %v1325_v18 = vsub.f32 %v2708_v10, %v2868_v59  ;;  %v1362_v58 = vmul.f32 %v1330_v19, %v1330_v19  ;;  %v1329_v31 = vsub.f32 %v2722_v33, %v2868_v59  ;;  %v1338_v19 = vsub.f32 %v2779_v52, %v2856_v53 }
 0x1df   : > { %v1293_v17 = vrot.slane %v1292_v43, 2  ;;  %v1353_v41 = vmul.f32 %v1321_v3, %v1321_v3 }
 0x1e1   : > { %v1114_v60 = vpop.f32.mrf.mxu0  ;;  %v1294_v12 = vadd.f32 %v1293_v17, %v1292_v43 }
 0x1e2   : > { %v1155_v15 = vpop.f32.mrf.mxu1 }
 0x1e3   : > { %v1295_v35 = vrot.slane %v1294_v12, 1 }
 0x1e4   : > { %v2847_v7 = vpop.f32.mrf.mxu2 }
 0x1e5   : > { %v2849_v20 = vpop.f32.mrf.mxu3  ;;  %v1296_v46 = vadd.f32 %v1295_v35, %v1294_v12  ;;  %v1398_v35 = vadd.f32 %v1358_v16, %v1354_v6 }
 0x1e7   : > { %v2859_v55 = vmul.f32 %v2853_v62, %v1296_v46  ;;  %v1357_v46 = vmul.f32 %v1325_v18, %v1325_v18 }
 0x1e9   : > { %v1117_v25 = vpop.f32.mrf.mxu0  ;;  %v1323_v42 = vsub.f32 %v2799_v11, %v2859_v55  ;;  %v1327_v43 = vsub.f32 %v2801_v24, %v2859_v55  ;;  %v1331_v39 = vsub.f32 %v2803_v34, %v2859_v55  ;;  %v1156_v24 = vadd.f32 %v1155_v15, %v1114_v60 }
 0x1ea   : > { %v1158_v26 = vpop.f32.mrf.mxu1  ;;  %v1335_v16 = vsub.f32 %v2805_v47, %v2859_v55  ;;  %v1385_v34 = vadd.f32 %v1357_v46, %v1353_v41  ;;  %v1337_v46 = vsub.f32 %v2745_v14, %v2868_v59 }
 0x1eb   : > { %v1355_v13 = vmul.f32 %v1323_v42, %v1323_v42  ;;  %v1359_v27 = vmul.f32 %v1327_v43, %v1327_v43  ;;  %v1399_v42 = vadd.f32 %v1398_v35, %v1362_v58  ;;  %v1153_v43 = vadd.f32 %v2839_v0, %v2837_v54 }
 0x1ec   : > { %v1199_v32 = vpop.f32.mrf.mxu2  ;;  %v1363_v3 = vmul.f32 %v1331_v39, %v1331_v39  ;;  %v1159_v18 = vadd.f32 %v1158_v26, %v1117_v25  ;;  %v1333_v54 = vsub.f32 %v2736_v48, %v2868_v59  ;;  %v1361_v0 = vmul.f32 %v1329_v31, %v1329_v31 }
 0x1ed   : > { %v2851_v38 = vpop.f32.mrf.mxu3  ;;  %v1411_v29 = vadd.f32 %v1359_v27, %v1355_v13  ;;  %v1366_v13 = vmul.f32 %v1334_v5, %v1334_v5  ;;  %v1197_v27 = vadd.f32 %v2847_v7, %v1156_v24  ;;  %v1194_v47 = vadd.f32 %v2843_v56, %v1153_v43 }
 0x1ee   : > { %v1339_v25 = vsub.f32 %v2807_v1, %v2859_v55  ;;  %v1367_v26 = vmul.f32 %v1335_v16, %v1335_v16  ;;  %v1200_v39 = vadd.f32 %v1199_v32, %v1159_v18  ;;  %v1386_v5 = vadd.f32 %v1385_v34, %v1361_v0 }
 0x1ef   : > { %v1412_v15 = vadd.f32 %v1411_v29, %v1363_v3  ;;  %v1400_v58 = vadd.f32 %v1399_v42, %v1366_v13  ;;  %v1342_v24 = vsub.f32 %v2785_v8, %v2856_v53  ;;  %v1370_v7 = vmul.f32 %v1338_v19, %v1338_v19 }
 0x1f0   : > { %v2905_v31 = vadd.f32 %v2849_v20, %v1197_v27  ;;  %v1365_v42 = vmul.f32 %v1333_v54, %v1333_v54  ;;  %v1343_v32 = vsub.f32 %v2809_v57, %v2859_v55  ;;  %v2913_v16 = vadd.f32 %v2851_v38, %v1200_v39 }
 0x1f1   : > { %v1120_v44 = vpop.f32.mrf.mxu0  ;;  %v1401_v43 = vadd.f32 %v1400_v58, %v1370_v7  ;;  %v1341_v38 = vsub.f32 %v2751_v21, %v2868_v59  ;;  %v1347_v27 = vsub.f32 %v2818_v2, %v2859_v55 }
 0x1f2   : > { %v1161_v4 = vpop.f32.mrf.mxu1  ;;  %v1387_v20 = vadd.f32 %v1386_v5, %v1365_v42  ;;  %v1375_v54 = vmul.f32 %v1343_v32, %v1343_v32 }
 0x1f3   : > { %v1162_v40 = vadd.f32 %v1161_v4, %v1120_v44  ;;  %v1413_v44 = vadd.f32 %v1412_v15, %v1367_v26  ;;  %v1373_v7 = vmul.f32 %v1341_v38, %v1341_v38 }
 0x1f4   : > { %v1202_v9 = vpop.f32.mrf.mxu2 }
 0x1f5   : > { %v2861_v23 = vpop.f32.mrf.mxu3  ;;  %v1203_v4 = vadd.f32 %v1202_v9, %v1162_v40  ;;  %v1374_v40 = vmul.f32 %v1342_v24, %v1342_v24  ;;  %v1345_v24 = vsub.f32 %v2757_v30, %v2868_v59 }
 0x1f7   : > { %v1402_v15 = vadd.f32 %v1401_v43, %v1374_v40  ;;  %v1377_v40 = vmul.f32 %v1345_v24, %v1345_v24 }
 0x1f9   : > { %v1123_v51 = vpop.f32.mrf.mxu0 }
 0x1fa   : > { %v1164_v17 = vpop.f32.mrf.mxu1 }
 0x1fb   : > { %v1165_v41 = vadd.f32 %v1164_v17, %v1123_v51  ;;  %v2910_v51 = vadd.f32 %v2845_v22, %v1194_v47  ;;  %v1371_v17 = vmul.f32 %v1339_v25, %v1339_v25  ;;  %v2920_v47 = vadd.f32 %v2861_v23, %v1203_v4 }
 0x1fc   : > { %v1205_v12 = vpop.f32.mrf.mxu2 }
 0x1fd   : > { %v2880_v36 = vpop.f32.mrf.mxu3  ;;  %v1206_v3 = vadd.f32 %v1205_v12, %v1165_v41  ;;  %v1297_v19 = vadd.f32 %v2905_v31, %v2910_v51  ;;  %v1369_v12 = vmul.f32 %v1337_v46, %v1337_v46 }
 0x1ff   : > { %v1298_v0 = vadd.f32 %v1297_v19, %v2913_v16  ;;  %v2928_v58 = vadd.f32 %v2880_v36, %v1206_v3  ;;  %v1388_v26 = vadd.f32 %v1387_v20, %v1369_v12  ;;  %v1351_v36 = vsub.f32 %v2833_v63, %v2859_v55 }
 0x201   : > { %v1126_v61 = vpop.f32.mrf.mxu0  ;;  %v1299_v41 = vadd.f32 %v1298_v0, %v2920_v47  ;;  %v1389_v32 = vadd.f32 %v1388_v26, %v1373_v7 }
 0x202   : > { %v1167_v6 = vpop.f32.mrf.mxu1 }
 0x203   : > { %v1168_v56 = vadd.f32 %v1167_v6, %v1126_v61  ;;  %v1346_v61 = vsub.f32 %v2791_v28, %v2856_v53  ;;  %v1414_v6 = vadd.f32 %v1413_v44, %v1371_v17 }
 0x204   : > { %v1208_v60 = vpop.f32.mrf.mxu2 }
 0x205   : > { %v1249_v35 = vpop.f32.mrf.mxu3  ;;  %v1209_v22 = vadd.f32 %v1208_v60, %v1168_v56  ;;  %v1378_v23 = vmul.f32 %v1346_v61, %v1346_v61  ;;  %v1350_v60 = vsub.f32 %v2797_v50, %v2856_v53  ;;  %v1415_v39 = vadd.f32 %v1414_v6, %v1375_v54 }
 0x206   : > { %v1379_v56 = vmul.f32 %v1347_v27, %v1347_v27  ;;  %v1349_v61 = vsub.f32 %v2763_v37, %v2868_v59  ;;  %v1383_v6 = vmul.f32 %v1351_v36, %v1351_v36 }
 0x207   : > { %v2933_v46 = vadd.f32 %v1249_v35, %v1209_v22  ;;  %v1403_v44 = vadd.f32 %v1402_v15, %v1378_v23  ;;  %v1382_v35 = vmul.f32 %v1350_v60, %v1350_v60 }
 0x208   : > { %v1416_v17 = vadd.f32 %v1415_v39, %v1379_v56  ;;  %v1381_v15 = vmul.f32 %v1349_v61, %v1349_v61 }
 0x209   : > { %v1129_v29 = vpop.f32.mrf.mxu0 }
 0x20a   : > { %v1170_v34 = vpop.f32.mrf.mxu1  ;;  %v1417_v38 = vadd.f32 %v1416_v17, %v1383_v6 }
 0x20b   : > { %v1171_v18 = vadd.f32 %v1170_v34, %v1129_v29  ;;  %v1300_v29 = vadd.f32 %v1299_v41, %v2928_v58 }
 0x20c   : > { %v1211_v9 = vpop.f32.mrf.mxu2 }
 0x20d   : > { %v1252_v13 = vpop.f32.mrf.mxu3  ;;  %v1212_v25 = vadd.f32 %v1211_v9, %v1171_v18  ;;  %v1301_v3 = vadd.f32 %v1300_v29, %v2933_v46  ;;  %v1404_v9 = vadd.f32 %v1403_v44, %v1382_v35 }
 0x20f   : > { %v2940_v42 = vadd.f32 %v1252_v13, %v1212_v25  ;;  %v1390_v13 = vadd.f32 %v1389_v32, %v1377_v40  ;;  %v1405_v27 = vrot.slane %v1404_v9, 4  ;;  %v1418_v25 = vrot.slane %v1417_v38, 4 }
 0x211   : > { %v1132_v5 = vpop.f32.mrf.mxu0  ;;  %v1302_v19 = vadd.f32 %v1301_v3, %v2940_v42  ;;  %v1391_v0 = vadd.f32 %v1390_v13, %v1381_v15  ;;  %v1406_v23 = vadd.f32 %v1405_v27, %v1404_v9  ;;  %v1419_v41 = vadd.f32 %v1418_v25, %v1417_v38 }
 0x212   : > { %v1173_v4 = vpop.f32.mrf.mxu1 }
 0x213   : > { %v1174_v43 = vadd.f32 %v1173_v4, %v1132_v5  ;;  %v1392_v39 = vrot.slane %v1391_v0, 4  ;;  %v1407_v24 = vrot.slane %v1406_v23, 2  ;;  %v1420_v36 = vrot.slane %v1419_v41, 2 }
 0x214   : > { %v1214_v34 = vpop.f32.mrf.mxu2 }
 0x215   : > { %v1215_v18 = vadd.f32 %v1214_v34, %v1174_v43  ;;  %v1255_v20 = vpop.f32.mrf.mxu3  ;;  %v1393_v44 = vadd.f32 %v1392_v39, %v1391_v0  ;;  %v1408_v56 = vadd.f32 %v1407_v24, %v1406_v23  ;;  %v1421_v32 = vadd.f32 %v1420_v36, %v1419_v41 }
 0x217   : > { %v2946_v22 = vadd.f32 %v1255_v20, %v1215_v18  ;;  %v1394_v43 = vrot.slane %v1393_v44, 2  ;;  %v1409_v3 = vrot.slane %v1408_v56, 1  ;;  %v1422_v9 = vrot.slane %v1421_v32, 1 }
 0x219   : > { %v1303_v12 = vadd.f32 %v1302_v19, %v2946_v22  ;;  %v1395_v40 = vadd.f32 %v1394_v43, %v1393_v44  ;;  %v1410_v38 = vadd.f32 %v1409_v3, %v1408_v56  ;;  %v1423_v0 = vadd.f32 %v1422_v9, %v1421_v32 }
 0x21b   : > { %v1304_v54 = vrot.slane %v1303_v12, 4 }
 0x21d   : > { %v1305_v26 = vadd.f32 %v1304_v54, %v1303_v12  ;;  %v1396_v54 = vrot.slane %v1395_v40, 1 }
 0x21f   : > { %v1306_v60 = vrot.slane %v1305_v26, 2  ;;  %v1397_v24 = vadd.f32 %v1396_v54, %v1395_v40 }
 0x221   : > { %v1307_v5 = vadd.f32 %v1306_v60, %v1305_v26  ;;  %v1438_v60 = vmul.f32 %v1410_v38, %v2853_v62  ;;  %v1437_v32 = vmul.f32 %v1397_v24, %v2853_v62 }
 0x223   : > { %v1308_v7 = vrot.slane %v1307_v5, 1  ;;  %v1442_v3 = vadd.f32 1e-05, %v1437_v32 }
 0x225   : > { %v1309_v4 = vadd.f32 %v1308_v7, %v1307_v5  ;;  %v1439_v7 = vmul.f32 %v1423_v0, %v2853_v62  ;;  %vm1452_vm11 = vweird.f32 %v1442_v3 }
 0x227   : > { %v2950_v29 = vmul.f32 %v2853_v62, %v1309_v4  ;;  %v1443_v4 = vadd.f32 1e-05, %v1438_v60 }
 0x229   : > { %v1324_v34 = vsub.f32 %v2910_v51, %v2950_v29  ;;  %v1328_v35 = vsub.f32 %v2905_v31, %v2950_v29  ;;  %v1332_v17 = vsub.f32 %v2913_v16, %v2950_v29  ;;  %v1336_v18 = vsub.f32 %v2920_v47, %v2950_v29 }
 0x22a   : > { %v1340_v6 = vsub.f32 %v2928_v58, %v2950_v29  ;;  %v1344_v12 = vsub.f32 %v2933_v46, %v2950_v29  ;;  %v1348_v25 = vsub.f32 %v2940_v42, %v2950_v29  ;;  %v1352_v39 = vsub.f32 %v2946_v22, %v2950_v29 }
 0x22b   : > { %v1356_v20 = vmul.f32 %v1324_v34, %v1324_v34  ;;  %v1360_v61 = vmul.f32 %v1328_v35, %v1328_v35  ;;  %v1364_v19 = vmul.f32 %v1332_v17, %v1332_v17  ;;  %v1368_v15 = vmul.f32 %v1336_v18, %v1336_v18 }
 0x22c   : > { %v1372_v26 = vmul.f32 %v1340_v6, %v1340_v6  ;;  %v1376_v41 = vmul.f32 %v1344_v12, %v1344_v12  ;;  %v1380_v44 = vmul.f32 %v1348_v25, %v1348_v25  ;;  %v1384_v56 = vmul.f32 %v1352_v39, %v1352_v39 }
 0x22d   : > { %v1424_v13 = vadd.f32 %v1360_v61, %v1356_v20  ;;  %v1444_v34 = vadd.f32 1e-05, %v1439_v7  ;;  %1908 = vrsqrt.f32 %v1443_v4  ;;  %vm1462_vm2 = vweird.f32 %v1443_v4 }
 0x22f   : > { %v1425_v27 = vadd.f32 %v1424_v13, %v1364_v19  ;;  %1910 = vrsqrt.f32 %v1444_v34  ;;  %vm1472_vm5 = vweird.f32 %v1444_v34 }
 0x230   : > { %1912 = vrsqrt.f32 %v1442_v3 }
 0x231   : > { %v1426_v23 = vadd.f32 %v1425_v27, %v1368_v15 }
 0x233   : > { %v1427_v5 = vadd.f32 %v1426_v23, %v1372_v26  ;;  %v1909_v61 = vpop.eup %1908 }
 0x234   : > { %v1457_v19 = vmul.f32 %v1909_v61, %v1443_v4  ;;  %vm1463_vm1 = vweird.f32 %v1909_v61 }
 0x235   : > { %v1428_v36 = vadd.f32 %v1427_v5, %v1376_v41  ;;  %v1911_v9 = vpop.eup %1910  ;;  %vm1464_vm4 = vmor %vm1462_vm2, %vm1463_vm1 }
 0x236   : > { %v1913_v38 = vpop.eup %1912  ;;  %v1467_v12 = vmul.f32 %v1911_v9, %v1444_v34  ;;  %v1458_v27 = vmul.f32 %v1909_v61, %v1457_v19  ;;  %vm1473_vm3 = vweird.f32 %v1911_v9 }
 0x237   : > { %v1429_v43 = vadd.f32 %v1428_v36, %v1380_v44  ;;  %v1447_v54 = vmul.f32 %v1913_v38, %v1442_v3  ;;  %vm1453_vm7 = vweird.f32 %v1913_v38  ;;  %vm1474_vm8 = vmor %vm1472_vm5, %vm1473_vm3 }
 0x238   : > { %v1468_v25 = vmul.f32 %v1911_v9, %v1467_v12  ;;  %v1459_v26 = vmul.f32 0.5, %v1458_v27  ;;  %vm1454_vm14 = vmor %vm1452_vm11, %vm1453_vm7 }
 0x239   : > { %v1430_v35 = vadd.f32 %v1429_v43, %v1384_v56  ;;  %v1448_v23 = vmul.f32 %v1913_v38, %v1447_v54 }
 0x23a   : > { %v1469_v60 = vmul.f32 0.5, %v1468_v25  ;;  %v1460_v39 = vsub.f32 1.5, %v1459_v26 }
 0x23b   : > { %v1431_v17 = vrot.slane %v1430_v35, 4  ;;  %v1449_v5 = vmul.f32 0.5, %v1448_v23 }
 0x23c   : > { %v1470_v24 = vsub.f32 1.5, %v1469_v60  ;;  %v1461_v44 = vmul.f32 %v1909_v61, %v1460_v39 }
 0x23d   : > { %v1432_v18 = vadd.f32 %v1431_v17, %v1430_v35  ;;  %v1450_v56 = vsub.f32 1.5, %v1449_v5 }
 0x23e   : > { %v1471_v43 = vmul.f32 %v1911_v9, %v1470_v24  ;;  %v1465_v32 = vsel %vm1464_vm4, %v1909_v61, %v1461_v44  ;;  %v1441_v61 = vld [vmem:[%s2324_s27] sm:$0xf] }
 0x23f   : > { %v1433_v20 = vrot.slane %v1432_v18, 2  ;;  %v1451_v17 = vmul.f32 %v1913_v38, %v1450_v56 }
 0x241   : > { %v1434_v40 = vadd.f32 %v1433_v20, %v1432_v18  ;;  %v1475_v18 = vsel %vm1474_vm8, %v1911_v9, %v1471_v43  ;;  %v1455_v34 = vsel %vm1454_vm14, %v1913_v38, %v1451_v17 }
 0x243   : > { %v1435_v6 = vrot.slane %v1434_v40, 1 }
 0x245   : > { %v1436_v13 = vadd.f32 %v1435_v6, %v1434_v40  ;;  %v1490_v40 = vrot.slane %v1465_v32, 7  ;;  %v1491_v6 = vrot.slane %v1475_v18, 6 }
 0x247   : > { %v1440_v15 = vmul.f32 %v1436_v13, %v2853_v62  ;;  %v1494_v13 = vsel %vm1493_vm12, %v1455_v34, %v1490_v40 }
 0x249   : > { %v1445_v0 = vadd.f32 1e-05, %v1440_v15 }
 0x24b   : > { %1914 = vrsqrt.f32 %v1445_v0  ;;  %vm1482_vm9 = vweird.f32 %v1445_v0 }
 0x251   : > { %v1915_v41 = vpop.eup %1914 }
 0x252   : > { %v1477_v7 = vmul.f32 %v1915_v41, %v1445_v0  ;;  %vm1483_vm6 = vweird.f32 %v1915_v41 }
 0x253   : > { %vm1484_vm10 = vmor %vm1482_vm9, %vm1483_vm6 }
 0x254   : > { %v1478_v36 = vmul.f32 %v1915_v41, %v1477_v7  ;;  %v1501_v7 = vld [vmem:[%s2327_s22] sm:$0xf] }
 0x256   : > { %v1479_v62 = vmul.f32 0.5, %v1478_v36 }
 0x258   : > { %v1480_v35 = vsub.f32 1.5, %v1479_v62 }
 0x25a   : > { %v1481_v20 = vmul.f32 %v1915_v41, %v1480_v35 }
 0x25c   : > { %v1485_v4 = vsel %vm1484_vm10, %v1915_v41, %v1481_v20 }
 0x25d   : > { %v1492_v19 = vrot.slane %v1485_v4, 5  ;;  %v3200_v4 = vld [vmem:[#allocation19_spill] sm:$0xff] }
 0x25f   : > { %v1496_v12 = vsel %vm1495_vm13, %v1491_v6, %v1492_v19 }
 0x260   : > { %v1498_v9 = vsel %vm1497_vm15, %v1494_v13, %v1496_v12 }
 0x261   : > { %v1500_v15 = vmul.f32 %v1498_v9, %v1441_v61  ;;  %v3201_v9 = vld [vmem:[#allocation17_spill] sm:$0xff] }
 0x263   : > { %v2976_v27 = vperm.slane %v1500_v15, 0  ;;  %v2978_v3 = vperm.slane %v1500_v15, 1  ;;  %v2980_v54 = vperm.slane %v1500_v15, 2  ;;  %v2982_v0 = vperm.slane %v1500_v15, 3 }
 0x265   : > { %v1512_v38 = vmul.f32 %v2978_v3, %v2856_v53  ;;  %v1513_v25 = vmul.f32 %v2980_v54, %v2859_v55  ;;  %v1514_v26 = vmul.f32 %v2982_v0, %v2950_v29  ;;  %v1511_v23 = vmul.f32 %v2976_v27, %v2868_v59 }
 0x266   : > { %v1527_v59 = vmul.f32 %v2976_v27, %v2694_v49  ;;  %v1528_v43 = vmul.f32 %v2978_v3, %v2765_v45  ;;  %v1529_v62 = vmul.f32 %v2980_v54, %v2799_v11  ;;  %v1530_v32 = vmul.f32 %v2982_v0, %v2910_v51  ;;  %v3199_v49 = vld [vmem:[#allocation16_spill] sm:$0xff] }
 0x267   : > { %v1519_v60 = vrot.slane %v1512_v38, 7  ;;  %v1520_v39 = vrot.slane %v1513_v25, 6  ;;  %v1521_v41 = vrot.slane %v1514_v26, 5  ;;  %v1531_v35 = vmul.f32 %v2976_v27, %v2708_v10  ;;  %v3202_v26 = vld [vmem:[#allocation20_spill] sm:$0xff] }
 0x268   : > { %v1532_v40 = vmul.f32 %v2978_v3, %v3199_v49  ;;  %v1533_v11 = vmul.f32 %v2980_v54, %v3200_v4  ;;  %v1534_v6 = vmul.f32 %v2982_v0, %v2905_v31  ;;  %v1535_v10 = vmul.f32 %v2976_v27, %v2722_v33 }
 0x269   : > { %v1522_v5 = vsel %vm1493_vm12, %v1511_v23, %v1519_v60  ;;  %v1523_v24 = vsel %vm1495_vm13, %v1520_v39, %v1521_v41  ;;  %v1536_v15 = vmul.f32 %v2978_v3, %v3201_v9  ;;  %v1537_v23 = vmul.f32 %v2980_v54, %v3202_v26 }
 0x26a   : > { %v1524_v53 = vsel %vm1497_vm15, %v1522_v5, %v1523_v24  ;;  %v1538_v33 = vmul.f32 %v2982_v0, %v2913_v16  ;;  %v1539_v5 = vmul.f32 %v2976_v27, %v2736_v48  ;;  %v3204_v16 = vld [vmem:[#allocation21_spill] sm:$0xff]  ;;  %v1542_v48 = vmul.f32 %v2982_v0, %v2920_v47 }
 0x26b   : > { %v1526_v44 = vsub.f32 %v1501_v7, %v1524_v53  ;;  %v3203_v53 = vld [vmem:[#allocation18_spill] sm:$0xff]  ;;  %v1545_v47 = vmul.f32 %v2980_v54, %v2807_v1  ;;  %v1548_v1 = vmul.f32 %v2978_v3, %v2785_v8  ;;  %v1551_v8 = vmul.f32 %v2976_v27, %v2757_v30 }
 0x26d   : > { %v2996_v36 = vperm.slane %v1526_v44, 0  ;;  %v2998_v55 = vperm.slane %v1526_v44, 1  ;;  %v3000_v29 = vperm.slane %v1526_v44, 2  ;;  %v3002_v56 = vperm.slane %v1526_v44, 3 }
 0x26e   : > { %v1540_v44 = vmul.f32 %v2978_v3, %v3203_v53 }
 0x26f   : > { %v1568_v17 = vadd.f32 %v2996_v36, %v1527_v59  ;;  %v1569_v18 = vadd.f32 %v2998_v55, %v1528_v43  ;;  %v1570_v20 = vadd.f32 %v3000_v29, %v1529_v62  ;;  %v1571_v45 = vadd.f32 %v3002_v56, %v1530_v32 }
 0x270   : > { %v1572_v51 = vadd.f32 %v2996_v36, %v1531_v35  ;;  %v1573_v19 = vadd.f32 %v2998_v55, %v1532_v40  ;;  %v1574_v34 = vadd.f32 %v3000_v29, %v1533_v11  ;;  %v1575_v38 = vadd.f32 %v3002_v56, %v1534_v6 }
 0x271   : > { %v1600_v61 = vmax.f32 %v1568_v17, 0.0  ;;  %v1601_v13 = vmax.f32 %v1569_v18, 0.0  ;;  %v1602_v12 = vmax.f32 %v1570_v20, 0.0  ;;  %v1603_v25 = vmax.f32 %v1571_v45, 0.0 }
 0x272   : > { %v1576_v31 = vadd.f32 %v2996_v36, %v1535_v10  ;;  %v1604_v60 = vmax.f32 %v1572_v51, 0.0  ;;  %v1577_v39 = vadd.f32 %v2998_v55, %v1536_v15  ;;  %v1605_v41 = vmax.f32 %v1573_v19, 0.0 }
 0x273   : > { %1632 = vst [vmem:[%s3036_s20] sm:$0xff] %v1600_v61  ;;  %v1578_v24 = vadd.f32 %v3000_v29, %v1537_v23  ;;  %v1606_v7 = vmax.f32 %v1574_v34, 0.0  ;;  %v1579_v59 = vadd.f32 %v3002_v56, %v1538_v33  ;;  %v1607_v43 = vmax.f32 %v1575_v38, 0.0 }
 0x274   : > { %1633 = vst [vmem:[%s3036_s20 + $0x8] sm:$0xff] %v1601_v13  ;;  %v1541_v62 = vmul.f32 %v2980_v54, %v3204_v16  ;;  %v1580_v32 = vadd.f32 %v2996_v36, %v1539_v5  ;;  %v1608_v35 = vmax.f32 %v1576_v31, 0.0  ;;  %v1581_v17 = vadd.f32 %v2998_v55, %v1540_v44 }
 0x275   : > { %1634 = vst [vmem:[%s3036_s20 + $0x10] sm:$0xff] %v1602_v12  ;;  %v1609_v18 = vmax.f32 %v1577_v39, 0.0  ;;  %v1543_v20 = vmul.f32 %v2976_v27, %v2745_v14  ;;  %v1610_v40 = vmax.f32 %v1578_v24, 0.0  ;;  %v1544_v45 = vmul.f32 %v2978_v3, %v2779_v52 }
 0x276   : > { %1635 = vst [vmem:[%s3036_s20 + $0x18] sm:$0xff] %v1603_v25  ;;  %v1582_v49 = vadd.f32 %v3000_v29, %v1541_v62  ;;  %v1583_v4 = vadd.f32 %v3002_v56, %v1542_v48  ;;  %v1611_v11 = vmax.f32 %v1579_v59, 0.0  ;;  %v1612_v6 = vmax.f32 %v1580_v32, 0.0 }
 0x277   : > { %1636 = vst [vmem:[%s3036_s20 + $0x20] sm:$0xff] %v1604_v60  ;;  %v1584_v51 = vadd.f32 %v2996_v36, %v1543_v20  ;;  %v1546_v14 = vmul.f32 %v2982_v0, %v2928_v58  ;;  %v1585_v10 = vadd.f32 %v2998_v55, %v1544_v45  ;;  %v1613_v19 = vmax.f32 %v1581_v17, 0.0 }
 0x278   : > { %1637 = vst [vmem:[%s3036_s20 + $0x28] sm:$0xff] %v1605_v41  ;;  %v1547_v52 = vmul.f32 %v2976_v27, %v2751_v21  ;;  %v1586_v34 = vadd.f32 %v3000_v29, %v1545_v47  ;;  %v1614_v61 = vmax.f32 %v1582_v49, 0.0  ;;  %v1615_v12 = vmax.f32 %v1583_v4, 0.0 }
 0x279   : > { %1638 = vst [vmem:[%s3036_s20 + $0x30] sm:$0xff] %v1606_v7  ;;  %v1587_v13 = vadd.f32 %v3002_v56, %v1546_v14  ;;  %v1549_v58 = vmul.f32 %v2980_v54, %v2809_v57  ;;  %v1616_v15 = vmax.f32 %v1584_v51, 0.0  ;;  %v1550_v21 = vmul.f32 %v2982_v0, %v2933_v46 }
 0x27a   : > { %1639 = vst [vmem:[%s3036_s20 + $0x38] sm:$0xff] %v1607_v43  ;;  %v1588_v9 = vadd.f32 %v2996_v36, %v1547_v52  ;;  %v1589_v38 = vadd.f32 %v2998_v55, %v1548_v1  ;;  %v1617_v25 = vmax.f32 %v1585_v10, 0.0  ;;  %v1618_v23 = vmax.f32 %v1586_v34, 0.0 }
 0x27b   : > { %1640 = vst [vmem:[%s3036_s20 + $0x40] sm:$0xff] %v1608_v35  ;;  %v1590_v26 = vadd.f32 %v3000_v29, %v1549_v58  ;;  %v1552_v57 = vmul.f32 %v2978_v3, %v2791_v28  ;;  %v1591_v31 = vadd.f32 %v3002_v56, %v1550_v21  ;;  %v1619_v60 = vmax.f32 %v1587_v13, 0.0 }
 0x27c   : > { %1641 = vst [vmem:[%s3036_s20 + $0x48] sm:$0xff] %v1609_v18  ;;  %v1553_v46 = vmul.f32 %v2980_v54, %v2818_v2  ;;  %v1592_v33 = vadd.f32 %v2996_v36, %v1551_v8  ;;  %v1620_v30 = vmax.f32 %v1588_v9, 0.0  ;;  %v1554_v39 = vmul.f32 %v2982_v0, %v2940_v42 }
 0x27d   : > { %1642 = vst [vmem:[%s3036_s20 + $0x50] sm:$0xff] %v1610_v40  ;;  %v1593_v41 = vadd.f32 %v2998_v55, %v1552_v57  ;;  %v1621_v28 = vmax.f32 %v1589_v38, 0.0  ;;  %v1555_v5 = vmul.f32 %v2976_v27, %v2763_v37  ;;  %v1622_v2 = vmax.f32 %v1590_v26, 0.0 }
 0x27e   : > { %1643 = vst [vmem:[%s3036_s20 + $0x58] sm:$0xff] %v1611_v11  ;;  %v1594_v24 = vadd.f32 %v3000_v29, %v1553_v46  ;;  %v1556_v7 = vmul.f32 %v2978_v3, %v2797_v50  ;;  %v1595_v53 = vadd.f32 %v3002_v56, %v1554_v39  ;;  %v1623_v42 = vmax.f32 %v1591_v31, 0.0 }
 0x27f   : > { %1644 = vst [vmem:[%s3036_s20 + $0x60] sm:$0xff] %v1612_v6  ;;  %v1557_v44 = vmul.f32 %v2980_v54, %v2833_v63  ;;  %v1596_v37 = vadd.f32 %v2996_v36, %v1555_v5  ;;  %v1624_v27 = vmax.f32 %v1592_v33, 0.0  ;;  %v1558_v59 = vmul.f32 %v2982_v0, %v2946_v22 }
 0x280   : > { %1645 = vst [vmem:[%s3036_s20 + $0x68] sm:$0xff] %v1613_v19  ;;  %v1597_v50 = vadd.f32 %v2998_v55, %v1556_v7  ;;  %v1625_v3 = vmax.f32 %v1593_v41, 0.0  ;;  %v1626_v16 = vmax.f32 %v1594_v24, 0.0  ;;  %v1627_v54 = vmax.f32 %v1595_v53, 0.0 }
 0x281   : > { %1646 = vst [vmem:[%s3036_s20 + $0x70] sm:$0xff] %v1614_v61  ;;  %v1598_v43 = vadd.f32 %v3000_v29, %v1557_v44  ;;  %v1599_v63 = vadd.f32 %v3002_v56, %v1558_v59  ;;  %v1628_v22 = vmax.f32 %v1596_v37, 0.0 }
 0x282   : > { %1647 = vst [vmem:[%s3036_s20 + $0x78] sm:$0xff] %v1615_v12  ;;  %v1629_v0 = vmax.f32 %v1597_v50, 0.0 }
 0x283   : > { %1648 = vst [vmem:[%s3036_s20 + $0x80] sm:$0xff] %v1616_v15  ;;  %v1630_v36 = vmax.f32 %v1598_v43, 0.0  ;;  %v1631_v55 = vmax.f32 %v1599_v63, 0.0 }
 0x284   : > { %1649 = vst [vmem:[%s3036_s20 + $0x88] sm:$0xff] %v1617_v25 }
 0x285   : > { %1650 = vst [vmem:[%s3036_s20 + $0x90] sm:$0xff] %v1618_v23 }
 0x286   : > { %1651 = vst [vmem:[%s3036_s20 + $0x98] sm:$0xff] %v1619_v60 }
 0x287   : > { %1652 = vst [vmem:[%s3036_s20 + $0xa0] sm:$0xff] %v1620_v30 }
 0x288   : > { %1653 = vst [vmem:[%s3036_s20 + $0xa8] sm:$0xff] %v1621_v28 }
 0x289   : > { %1654 = vst [vmem:[%s3036_s20 + $0xb0] sm:$0xff] %v1622_v2 }
 0x28a   : > { %1655 = vst [vmem:[%s3036_s20 + $0xb8] sm:$0xff] %v1623_v42 }
 0x28b   : > { %1656 = vst [vmem:[%s3036_s20 + $0xc0] sm:$0xff] %v1624_v27 }
 0x28c   : > { %1657 = vst [vmem:[%s3036_s20 + $0xc8] sm:$0xff] %v1625_v3 }
 0x28d   : > { %1658 = vst [vmem:[%s3036_s20 + $0xd0] sm:$0xff] %v1626_v16 }
 0x28e   : > { %1659 = vst [vmem:[%s3036_s20 + $0xd8] sm:$0xff] %v1627_v54 }
 0x28f   : > { %1660 = vst [vmem:[%s3036_s20 + $0xe0] sm:$0xff] %v1628_v22 }
 0x290   : > { %1661 = vst [vmem:[%s3036_s20 + $0xe8] sm:$0xff] %v1629_v0 }
 0x291   : > { %1662 = vst [vmem:[%s3036_s20 + $0xf0] sm:$0xff] %v1630_v36 }
 0x292   : > { %1663 = vst [vmem:[%s3036_s20 + $0xf8] sm:$0xff] %v1631_v55 }
 0x293   : > { %2077 = shalt.err (!%p2074_p5)
}
 0x294   : > { %s2131_s13 = smov 512   ;;  %s2132_s12 = smov 1024  }
 0x295   : > { %s2133_s27 = smov 32  }
 0x296   : > { %1842 = dma.vmem_to_hbm [thread:$0]  (%p2251_p11), %s1678_s24, 4096, %s1680_s6, %s1665_s10, %s2131_s13, %s2132_s12, %s2133_s27  }
 0x297 PF: > { %s1694_s11 = sand.u32 1, %s2112_s15   ;;  %p3205_p7 = scmp.ge.s32.totalorder %s2124_s18, 2 }
 0x298   : > { %s1695_s22 = scalar_lea.sflag [#allocation4], %s1694_s11 }
 0x299   : > { %p1859_p9 = pnand %p3205_p7, %p2255_p12 }
 0x29b   : > { %p1860_p13 = pneg %p1859_p9 }
 0x29d   : > { %2107 = dma.done.wait (%p1860_p13), %s1695_s22, 4096  }
 0x29e   : > { %2109 = vsyncadd (%p1860_p13), %s1695_s22, 4294963200  ;;  %s3206_s29 = sld [smem:[#allocation15_spill]]  ;;  %p21_p0 = scmp.ge.s32.totalorder %s2180_s19, 4  }
 0x29f   : > { %s3207_s15 = smov %s2116_s16  ;;  %s3208_s16 = smov %s2120_s17 }
 0x2a0   : > { %s3210_s18 = smov %s2180_s19  ;;  %23 = sbr.rel (!%p21_p0) target bundleno = 11 (0xb), region = 110 }
 0x2a4   : > { %s3209_s17 = smov %s3206_s29 }
 0x2a5   :  { %1701 = vsyncpa [#allocation3], 1 }
 0x2a6   :  { %1703 = vsyncpa [#allocation3 + $0x1], 1 }
 0x2a7   :  { %1704 = vsyncpa [#allocation6], 1 }
 0x2a8   :  { %1706 = vsyncpa [#allocation6 + $0x1], 1 }
 0x2a9   :  { %1707 = vsyncpa [#allocation9], 1 }
 0x2aa   :  { %1709 = vsyncpa [#allocation9 + $0x1], 1 }
 0x2ab   :  { %1710 = vsyncpa [#allocation4], 1 }
 0x2ac   :  { %1712 = vsyncpa [#allocation4 + $0x1], 1 }

</bundles_post_ra>
